<compile_context>
chip_gen: v7x
topology: tpu7x:2x2x1
jax: 0.10.0
libtpu: 0.0.40
codegen_flags: <defaults>
</compile_context>

<pallas_src>
import functools

import numpy as np
import jax
import jax.numpy as jnp
from jax.experimental import pallas as pl
from jax.experimental.pallas import tpu as pltpu

NUM_LAYERS = 3


def lstm_freq_kernel(xa_ref, proj_ref, wrec_ref, out_ref, *, batch, hidden, seq):
    B, H, T = batch, hidden, seq
    G = 4 * H
    bf = jnp.bfloat16

    # One lane-dense matmul yields the layer-0 gate pre-activations for ALL
    # timesteps (DFT + W_ih0 + b0 folded in) plus b1 / b2 / b_fc broadcast over
    # B via the ones column of xa.  Kept f32: it runs once in the preamble.
    u = jnp.dot(xa_ref[...], proj_ref[...],
                preferred_element_type=jnp.float32)        # (B, (T+3)*G)
    b1 = u[:, (T + 0) * G:(T + 1) * G]                     # (B, G)
    b2 = u[:, (T + 1) * G:(T + 2) * G]                     # (B, G)
    bfc = u[:, (T + 2) * G:(T + 3) * G]                    # (B, G)  (cols >= O are 0)

    # Static, loop-invariant slices of the packed bf16 weights.
    whh0 = wrec_ref[0 * H:1 * H, :]                        # (H, G)
    w1a = wrec_ref[1 * H:2 * H, :]                         # (H, G) = W_ih1.T
    w1b = wrec_ref[2 * H:3 * H, :]                         # (H, G) = W_hh1.T
    w2a = wrec_ref[3 * H:4 * H, :]                         # (H, G) = W_ih2.T
    w2b = wrec_ref[4 * H:5 * H, :]                         # (H, G) = W_hh2.T
    wfc = wrec_ref[5 * H:6 * H, :]                         # (H, G) = [W_fc.T | 0]

    def gates(g, c):
        # One sigmoid pass over the full (B, 4H) vector (one vreg at 4H=128);
        # tanh only on the g-slice.  All elementwise math in f32.
        s = jax.nn.sigmoid(g)
        i = s[:, 0 * H:1 * H]
        f = s[:, 1 * H:2 * H]
        o = s[:, 3 * H:4 * H]
        gg = jnp.tanh(g[:, 2 * H:3 * H])
        c_new = f * c + i * gg
        return o * jnp.tanh(c_new), c_new

    z = jnp.zeros((B, H), jnp.float32)
    h0 = c0 = h1 = c1 = h2 = c2 = z

    # Fully unrolled recurrence: 5 small bf16 MXU dots per timestep, no concat,
    # no scratch traffic.  bf16 only at the dot operands, state stays f32.
    for t in range(T):
        g0 = u[:, t * G:(t + 1) * G] + jnp.dot(
            h0.astype(bf), whh0, preferred_element_type=jnp.float32)
        h0, c0 = gates(g0, c0)
        g1 = (jnp.dot(h0.astype(bf), w1a, preferred_element_type=jnp.float32)
              + jnp.dot(h1.astype(bf), w1b, preferred_element_type=jnp.float32)
              + b1)
        h1, c1 = gates(g1, c1)
        g2 = (jnp.dot(h1.astype(bf), w2a, preferred_element_type=jnp.float32)
              + jnp.dot(h2.astype(bf), w2b, preferred_element_type=jnp.float32)
              + b2)
        h2, c2 = gates(g2, c2)
        # TODO(synk): inter-layer dropout (p=0.2) is training-only in nn.LSTM;
        # it is a no-op for the eval/inference forward pass, so omitted.

    # fc(out[:, -1, :]) — output padded to G=128 lanes (unmasked store);
    # the wrapper slices back to output_len.
    out_ref[...] = (jnp.dot(h2.astype(bf), wfc, preferred_element_type=jnp.float32)
                    + bfc).astype(out_ref.dtype)


def lstm_predictor_with_freq(x, params, hidden_size, output_len):
    """x: (B, T, F) float32. Returns (B, output_len) float32."""
    B, T, F = x.shape
    H = hidden_size
    G = 4 * H
    assert output_len <= G, "FC output is packed into the 4H-wide weight blob"
    K = T * F + 1                    # flattened (t,f) features + ones column
    Kpad = ((K + 7) // 8) * 8
    Ncols = (T + 3) * G              # T gate blocks + b1 + b2 + b_fc blocks

    # DFT matrices (host-side numpy; int64 index product avoids overflow for
    # large T).  torch.fft.fft convention: X_t = sum_u x_u * exp(-2*pi*i*t*u/T).
    tk = np.mod(np.outer(np.arange(T, dtype=np.int64),
                         np.arange(T, dtype=np.int64)), T)
    ang = (2.0 * np.pi / T) * tk.astype(np.float64)
    cos = jnp.asarray(np.cos(ang), jnp.float32)          # (T, T)
    nsin = jnp.asarray(-np.sin(ang), jnp.float32)        # (T, T)

    w_ih0, w_hh0, b_ih0, b_hh0 = params['l0']
    w_ih1, w_hh1, b_ih1, b_hh1 = params['l1']
    w_ih2, w_hh2, b_ih2, b_hh2 = params['l2']
    w_fc, b_fc = params['fc']

    W_r = w_ih0[:, :F].T                                  # (F, G) — real half
    W_i = w_ih0[:, F:].T                                  # (F, G) — imag half
    b0 = b_ih0 + b_hh0                                    # (G,)
    b1 = b_ih1 + b_hh1
    b2 = b_ih2 + b_hh2
    bfc = jnp.pad(b_fc, (0, G - output_len))              # (G,)

    # proj[(u*F+f), (t*G+g)] = cos[t,u]*W_r[f,g] + nsin[t,u]*W_i[f,g]
    # (DFT folded into the layer-0 input projection).  Grows as T^2 — fine for
    # small T; for long sequences keep the two-stage DFT+projection instead.
    A = (jnp.einsum('tu,fg->uftg', cos, W_r)
         + jnp.einsum('tu,fg->uftg', nsin, W_i)).reshape(T * F, T * G)
    A = jnp.concatenate([A, jnp.zeros((T * F, 3 * G), jnp.float32)], axis=1)
    bias_row = jnp.concatenate([jnp.tile(b0, T), b1, b2, bfc])[None, :]
    pad_rows = jnp.zeros((Kpad - T * F - 1, Ncols), jnp.float32)
    proj = jnp.concatenate([A, bias_row, pad_rows], axis=0).astype(jnp.float32)

    # x flattened over (t, f) per batch row + ones column (for the folded
    # biases) + zero pad to an 8-multiple contraction length.
    xa = jnp.concatenate(
        [x.reshape(B, T * F).astype(jnp.float32),
         jnp.ones((B, 1), jnp.float32),
         jnp.zeros((B, Kpad - T * F - 1), jnp.float32)], axis=1)   # (B, Kpad)

    # All recurrent weights + FC weight in one bf16 blob of (H, G) sections.
    wfc_pad = jnp.pad(w_fc.T, ((0, 0), (0, G - output_len)))       # (H, G)
    wrec = jnp.concatenate(
        [w_hh0.T, w_ih1.T, w_hh1.T, w_ih2.T, w_hh2.T, wfc_pad],
        axis=0).astype(jnp.bfloat16)                                # (6H, G)

    kernel = functools.partial(lstm_freq_kernel, batch=B, hidden=H, seq=T)
    vmem = pl.BlockSpec(memory_space=pltpu.MemorySpace.VMEM)

    # TODO(synk): for large batches on v7x, add a grid over the batch axis with
    # dimension_semantics=("parallel",) so both TensorCores are used; at B=2 a
    # grid would only add per-step overhead.
    out = pl.pallas_call(
        kernel,
        out_shape=jax.ShapeDtypeStruct((B, G), jnp.float32),
        in_specs=[vmem, vmem, vmem],
        out_specs=vmem,
    )(xa, proj, wrec)
    return out[:, :output_len]


def ref_forward(x, params, hidden_size):
    """Pure-JAX reference mirroring the PyTorch module (eval mode)."""
    B, T, F = x.shape
    H = hidden_size
    ff = jnp.fft.fft(x, axis=1)
    feat = jnp.concatenate([jnp.real(ff), jnp.imag(ff)], axis=-1).astype(jnp.float32)
    hs = [jnp.zeros((B, H), jnp.float32) for _ in range(NUM_LAYERS)]
    cs = [jnp.zeros((B, H), jnp.float32) for _ in range(NUM_LAYERS)]
    for t in range(T):
        x_in = feat[:, t, :]
        for l in range(NUM_LAYERS):
            w_ih, w_hh, b_ih, b_hh = params[f'l{l}']
            g = x_in @ w_ih.T + hs[l] @ w_hh.T + b_ih + b_hh
            i = jax.nn.sigmoid(g[:, 0:H])
            f = jax.nn.sigmoid(g[:, H:2 * H])
            gg = jnp.tanh(g[:, 2 * H:3 * H])
            o = jax.nn.sigmoid(g[:, 3 * H:4 * H])
            cs[l] = f * cs[l] + i * gg
            hs[l] = o * jnp.tanh(cs[l])
            x_in = hs[l]
    w_fc, b_fc = params['fc']
    return hs[NUM_LAYERS - 1] @ w_fc.T + b_fc


if __name__ == "__main__":
    key = jax.random.PRNGKey(0)
    B, T, F = 2, 8, 4              # batch, seq_len, input_size
    H, O = 32, 90                  # hidden_size, output_len

    keys = jax.random.split(key, 16)
    x = jax.random.normal(keys[0], (B, T, F), jnp.float32)

    bound = 1.0 / jnp.sqrt(jnp.float32(H))

    def uni(kk, shape):
        return jax.random.uniform(kk, shape, jnp.float32, -bound, bound)

    params = {}
    ki = 1
    for l in range(NUM_LAYERS):
        in_dim = 2 * F if l == 0 else H
        params[f'l{l}'] = (uni(keys[ki + 0], (4 * H, in_dim)),   # weight_ih_l{l}
                           uni(keys[ki + 1], (4 * H, H)),        # weight_hh_l{l}
                           uni(keys[ki + 2], (4 * H,)),          # bias_ih_l{l}
                           uni(keys[ki + 3], (4 * H,)))          # bias_hh_l{l}
        ki += 4
    params['fc'] = (uni(keys[ki], (O, H)), uni(keys[ki + 1], (O,)))

    out = lstm_predictor_with_freq(x, params, H, O)
    out = jax.block_until_ready(out)

    ref = ref_forward(x, params, H)
    assert out.shape == (B, O), out.shape
    max_err = float(jnp.max(jnp.abs(out - ref)))
    assert jnp.allclose(out, ref, atol=2e-2, rtol=2e-2), max_err

    print("KERNEL_OK")
</pallas_src>

<mosaic_0001>
module attributes {stable_mosaic.version = 11 : i64} {
  func.func @lstm_freq_kernel(%arg0: memref<2x40xf32, #tpu.memory_space<vmem>>, %arg1: memref<40x1408xf32, #tpu.memory_space<vmem>>, %arg2: memref<192x128xbf16, #tpu.memory_space<vmem>>, %arg3: memref<2x128xf32, #tpu.memory_space<vmem>>) attributes {dimension_semantics = [], scalar_prefetch = 0 : i64, scratch_operands = 0 : i64, tpu.core_type = #tpu.core_type<tc>} {
    %c0 = arith.constant 0 : index
    %c0_0 = arith.constant 0 : index
    %0 = vector.load %arg0[%c0, %c0_0] : memref<2x40xf32, #tpu.memory_space<vmem>>, vector<2x40xf32>
    %c0_1 = arith.constant 0 : index
    %c0_2 = arith.constant 0 : index
    %1 = vector.load %arg1[%c0_1, %c0_2] : memref<40x1408xf32, #tpu.memory_space<vmem>>, vector<40x1408xf32>
    %cst = arith.constant dense<0.000000e+00> : vector<2x1408xf32>
    %2 = tpu.matmul %0, %1, %cst {dimension_numbers = #tpu.dot_dimension_numbers<[1], [0], [0], [1], [0, 0, 1, 1], [], []>} : vector<2x40xf32>, vector<40x1408xf32>, vector<2x1408xf32> -> vector<2x1408xf32>
    %3 = vector.extract_strided_slice %2 {offsets = [0, 1024], sizes = [2, 128], strides = [1, 1]} : vector<2x1408xf32> to vector<2x128xf32>
    %4 = vector.extract_strided_slice %2 {offsets = [0, 1152], sizes = [2, 128], strides = [1, 1]} : vector<2x1408xf32> to vector<2x128xf32>
    %5 = vector.extract_strided_slice %2 {offsets = [0, 1280], sizes = [2, 128], strides = [1, 1]} : vector<2x1408xf32> to vector<2x128xf32>
    %c0_3 = arith.constant 0 : index
    %c0_4 = arith.constant 0 : index
    %6 = vector.load %arg2[%c0_3, %c0_4] : memref<192x128xbf16, #tpu.memory_space<vmem>>, vector<32x128xbf16>
    %c32 = arith.constant 32 : index
    %c0_5 = arith.constant 0 : index
    %7 = vector.load %arg2[%c32, %c0_5] : memref<192x128xbf16, #tpu.memory_space<vmem>>, vector<32x128xbf16>
    %c64 = arith.constant 64 : index
    %c0_6 = arith.constant 0 : index
    %8 = vector.load %arg2[%c64, %c0_6] : memref<192x128xbf16, #tpu.memory_space<vmem>>, vector<32x128xbf16>
    %c96 = arith.constant 96 : index
    %c0_7 = arith.constant 0 : index
    %9 = vector.load %arg2[%c96, %c0_7] : memref<192x128xbf16, #tpu.memory_space<vmem>>, vector<32x128xbf16>
    %c128 = arith.constant 128 : index
    %c0_8 = arith.constant 0 : index
    %10 = vector.load %arg2[%c128, %c0_8] : memref<192x128xbf16, #tpu.memory_space<vmem>>, vector<32x128xbf16>
    %c160 = arith.constant 160 : index
    %c0_9 = arith.constant 0 : index
    %11 = vector.load %arg2[%c160, %c0_9] : memref<192x128xbf16, #tpu.memory_space<vmem>>, vector<32x128xbf16>
    %cst_10 = arith.constant 0.000000e+00 : f32
    %12 = vector.broadcast %cst_10 : f32 to vector<2x32xf32>
    %13 = vector.extract_strided_slice %2 {offsets = [0, 0], sizes = [2, 128], strides = [1, 1]} : vector<2x1408xf32> to vector<2x128xf32>
    %14 = arith.truncf %12 : vector<2x32xf32> to vector<2x32xbf16>
    %cst_11 = arith.constant dense<0.000000e+00> : vector<2x128xf32>
    %15 = tpu.matmul %14, %6, %cst_11 {dimension_numbers = #tpu.dot_dimension_numbers<[1], [0], [0], [1], [0, 0, 1, 1], [], []>} : vector<2x32xbf16>, vector<32x128xbf16>, vector<2x128xf32> -> vector<2x128xf32>
    %16 = arith.addf %13, %15 : vector<2x128xf32>
    %17 = arith.negf %16 : vector<2x128xf32>
    %18 = math.exp %17 : vector<2x128xf32>
    %cst_12 = arith.constant 1.000000e+00 : f32
    %19 = vector.broadcast %cst_12 : f32 to vector<2x128xf32>
    %20 = arith.addf %19, %18 : vector<2x128xf32>
    %21 = arith.divf %19, %20 : vector<2x128xf32>
    %22 = vector.extract_strided_slice %21 {offsets = [0, 0], sizes = [2, 32], strides = [1, 1]} : vector<2x128xf32> to vector<2x32xf32>
    %23 = vector.extract_strided_slice %21 {offsets = [0, 32], sizes = [2, 32], strides = [1, 1]} : vector<2x128xf32> to vector<2x32xf32>
    %24 = vector.extract_strided_slice %21 {offsets = [0, 96], sizes = [2, 32], strides = [1, 1]} : vector<2x128xf32> to vector<2x32xf32>
    %25 = vector.extract_strided_slice %16 {offsets = [0, 64], sizes = [2, 32], strides = [1, 1]} : vector<2x128xf32> to vector<2x32xf32>
    %26 = math.tanh %25 : vector<2x32xf32>
    %27 = arith.mulf %23, %12 : vector<2x32xf32>
    %28 = arith.mulf %22, %26 : vector<2x32xf32>
    %29 = arith.addf %27, %28 : vector<2x32xf32>
    %30 = math.tanh %29 : vector<2x32xf32>
    %31 = arith.mulf %24, %30 : vector<2x32xf32>
    %32 = arith.truncf %31 : vector<2x32xf32> to vector<2x32xbf16>
    %cst_13 = arith.constant dense<0.000000e+00> : vector<2x128xf32>
    %33 = tpu.matmul %32, %7, %cst_13 {dimension_numbers = #tpu.dot_dimension_numbers<[1], [0], [0], [1], [0, 0, 1, 1], [], []>} : vector<2x32xbf16>, vector<32x128xbf16>, vector<2x128xf32> -> vector<2x128xf32>
    %34 = arith.truncf %12 : vector<2x32xf32> to vector<2x32xbf16>
    %cst_14 = arith.constant dense<0.000000e+00> : vector<2x128xf32>
    %35 = tpu.matmul %34, %8, %cst_14 {dimension_numbers = #tpu.dot_dimension_numbers<[1], [0], [0], [1], [0, 0, 1, 1], [], []>} : vector<2x32xbf16>, vector<32x128xbf16>, vector<2x128xf32> -> vector<2x128xf32>
    %36 = arith.addf %33, %35 : vector<2x128xf32>
    %37 = arith.addf %36, %3 : vector<2x128xf32>
    %38 = arith.negf %37 : vector<2x128xf32>
    %39 = math.exp %38 : vector<2x128xf32>
    %cst_15 = arith.constant 1.000000e+00 : f32
    %40 = vector.broadcast %cst_15 : f32 to vector<2x128xf32>
    %41 = arith.addf %40, %39 : vector<2x128xf32>
    %42 = arith.divf %40, %41 : vector<2x128xf32>
    %43 = vector.extract_strided_slice %42 {offsets = [0, 0], sizes = [2, 32], strides = [1, 1]} : vector<2x128xf32> to vector<2x32xf32>
    %44 = vector.extract_strided_slice %42 {offsets = [0, 32], sizes = [2, 32], strides = [1, 1]} : vector<2x128xf32> to vector<2x32xf32>
    %45 = vector.extract_strided_slice %42 {offsets = [0, 96], sizes = [2, 32], strides = [1, 1]} : vector<2x128xf32> to vector<2x32xf32>
    %46 = vector.extract_strided_slice %37 {offsets = [0, 64], sizes = [2, 32], strides = [1, 1]} : vector<2x128xf32> to vector<2x32xf32>
    %47 = math.tanh %46 : vector<2x32xf32>
    %48 = arith.mulf %44, %12 : vector<2x32xf32>
    %49 = arith.mulf %43, %47 : vector<2x32xf32>
    %50 = arith.addf %48, %49 : vector<2x32xf32>
    %51 = math.tanh %50 : vector<2x32xf32>
    %52 = arith.mulf %45, %51 : vector<2x32xf32>
    %53 = arith.truncf %52 : vector<2x32xf32> to vector<2x32xbf16>
    %cst_16 = arith.constant dense<0.000000e+00> : vector<2x128xf32>
    %54 = tpu.matmul %53, %9, %cst_16 {dimension_numbers = #tpu.dot_dimension_numbers<[1], [0], [0], [1], [0, 0, 1, 1], [], []>} : vector<2x32xbf16>, vector<32x128xbf16>, vector<2x128xf32> -> vector<2x128xf32>
    %55 = arith.truncf %12 : vector<2x32xf32> to vector<2x32xbf16>
    %cst_17 = arith.constant dense<0.000000e+00> : vector<2x128xf32>
    %56 = tpu.matmul %55, %10, %cst_17 {dimension_numbers = #tpu.dot_dimension_numbers<[1], [0], [0], [1], [0, 0, 1, 1], [], []>} : vector<2x32xbf16>, vector<32x128xbf16>, vector<2x128xf32> -> vector<2x128xf32>
    %57 = arith.addf %54, %56 : vector<2x128xf32>
    %58 = arith.addf %57, %4 : vector<2x128xf32>
    %59 = arith.negf %58 : vector<2x128xf32>
    %60 = math.exp %59 : vector<2x128xf32>
    %cst_18 = arith.constant 1.000000e+00 : f32
    %61 = vector.broadcast %cst_18 : f32 to vector<2x128xf32>
    %62 = arith.addf %61, %60 : vector<2x128xf32>
    %63 = arith.divf %61, %62 : vector<2x128xf32>
    %64 = vector.extract_strided_slice %63 {offsets = [0, 0], sizes = [2, 32], strides = [1, 1]} : vector<2x128xf32> to vector<2x32xf32>
    %65 = vector.extract_strided_slice %63 {offsets = [0, 32], sizes = [2, 32], strides = [1, 1]} : vector<2x128xf32> to vector<2x32xf32>
    %66 = vector.extract_strided_slice %63 {offsets = [0, 96], sizes = [2, 32], strides = [1, 1]} : vector<2x128xf32> to vector<2x32xf32>
    %67 = vector.extract_strided_slice %58 {offsets = [0, 64], sizes = [2, 32], strides = [1, 1]} : vector<2x128xf32> to vector<2x32xf32>
    %68 = math.tanh %67 : vector<2x32xf32>
    %69 = arith.mulf %65, %12 : vector<2x32xf32>
    %70 = arith.mulf %64, %68 : vector<2x32xf32>
    %71 = arith.addf %69, %70 : vector<2x32xf32>
    %72 = math.tanh %71 : vector<2x32xf32>
    %73 = arith.mulf %66, %72 : vector<2x32xf32>
    %74 = vector.extract_strided_slice %2 {offsets = [0, 128], sizes = [2, 128], strides = [1, 1]} : vector<2x1408xf32> to vector<2x128xf32>
    %75 = arith.truncf %31 : vector<2x32xf32> to vector<2x32xbf16>
    %cst_19 = arith.constant dense<0.000000e+00> : vector<2x128xf32>
    %76 = tpu.matmul %75, %6, %cst_19 {dimension_numbers = #tpu.dot_dimension_numbers<[1], [0], [0], [1], [0, 0, 1, 1], [], []>} : vector<2x32xbf16>, vector<32x128xbf16>, vector<2x128xf32> -> vector<2x128xf32>
    %77 = arith.addf %74, %76 : vector<2x128xf32>
    %78 = arith.negf %77 : vector<2x128xf32>
    %79 = math.exp %78 : vector<2x128xf32>
    %cst_20 = arith.constant 1.000000e+00 : f32
    %80 = vector.broadcast %cst_20 : f32 to vector<2x128xf32>
    %81 = arith.addf %80, %79 : vector<2x128xf32>
    %82 = arith.divf %80, %81 : vector<2x128xf32>
    %83 = vector.extract_strided_slice %82 {offsets = [0, 0], sizes = [2, 32], strides = [1, 1]} : vector<2x128xf32> to vector<2x32xf32>
    %84 = vector.extract_strided_slice %82 {offsets = [0, 32], sizes = [2, 32], strides = [1, 1]} : vector<2x128xf32> to vector<2x32xf32>
    %85 = vector.extract_strided_slice %82 {offsets = [0, 96], sizes = [2, 32], strides = [1, 1]} : vector<2x128xf32> to vector<2x32xf32>
    %86 = vector.extract_strided_slice %77 {offsets = [0, 64], sizes = [2, 32], strides = [1, 1]} : vector<2x128xf32> to vector<2x32xf32>
    %87 = math.tanh %86 : vector<2x32xf32>
    %88 = arith.mulf %84, %29 : vector<2x32xf32>
    %89 = arith.mulf %83, %87 : vector<2x32xf32>
    %90 = arith.addf %88, %89 : vector<2x32xf32>
    %91 = math.tanh %90 : vector<2x32xf32>
    %92 = arith.mulf %85, %91 : vector<2x32xf32>
    %93 = arith.truncf %92 : vector<2x32xf32> to vector<2x32xbf16>
    %cst_21 = arith.constant dense<0.000000e+00> : vector<2x128xf32>
    %94 = tpu.matmul %93, %7, %cst_21 {dimension_numbers = #tpu.dot_dimension_numbers<[1], [0], [0], [1], [0, 0, 1, 1], [], []>} : vector<2x32xbf16>, vector<32x128xbf16>, vector<2x128xf32> -> vector<2x128xf32>
    %95 = arith.truncf %52 : vector<2x32xf32> to vector<2x32xbf16>
    %cst_22 = arith.constant dense<0.000000e+00> : vector<2x128xf32>
    %96 = tpu.matmul %95, %8, %cst_22 {dimension_numbers = #tpu.dot_dimension_numbers<[1], [0], [0], [1], [0, 0, 1, 1], [], []>} : vector<2x32xbf16>, vector<32x128xbf16>, vector<2x128xf32> -> vector<2x128xf32>
    %97 = arith.addf %94, %96 : vector<2x128xf32>
    %98 = arith.addf %97, %3 : vector<2x128xf32>
    %99 = arith.negf %98 : vector<2x128xf32>
    %100 = math.exp %99 : vector<2x128xf32>
    %cst_23 = arith.constant 1.000000e+00 : f32
    %101 = vector.broadcast %cst_23 : f32 to vector<2x128xf32>
    %102 = arith.addf %101, %100 : vector<2x128xf32>
    %103 = arith.divf %101, %102 : vector<2x128xf32>
    %104 = vector.extract_strided_slice %103 {offsets = [0, 0], sizes = [2, 32], strides = [1, 1]} : vector<2x128xf32> to vector<2x32xf32>
    %105 = vector.extract_strided_slice %103 {offsets = [0, 32], sizes = [2, 32], strides = [1, 1]} : vector<2x128xf32> to vector<2x32xf32>
    %106 = vector.extract_strided_slice %103 {offsets = [0, 96], sizes = [2, 32], strides = [1, 1]} : vector<2x128xf32> to vector<2x32xf32>
    %107 = vector.extract_strided_slice %98 {offsets = [0, 64], sizes = [2, 32], strides = [1, 1]} : vector<2x128xf32> to vector<2x32xf32>
    %108 = math.tanh %107 : vector<2x32xf32>
    %109 = arith.mulf %105, %50 : vector<2x32xf32>
    %110 = arith.mulf %104, %108 : vector<2x32xf32>
    %111 = arith.addf %109, %110 : vector<2x32xf32>
    %112 = math.tanh %111 : vector<2x32xf32>
    %113 = arith.mulf %106, %112 : vector<2x32xf32>
    %114 = arith.truncf %113 : vector<2x32xf32> to vector<2x32xbf16>
    %cst_24 = arith.constant dense<0.000000e+00> : vector<2x128xf32>
    %115 = tpu.matmul %114, %9, %cst_24 {dimension_numbers = #tpu.dot_dimension_numbers<[1], [0], [0], [1], [0, 0, 1, 1], [], []>} : vector<2x32xbf16>, vector<32x128xbf16>, vector<2x128xf32> -> vector<2x128xf32>
    %116 = arith.truncf %73 : vector<2x32xf32> to vector<2x32xbf16>
    %cst_25 = arith.constant dense<0.000000e+00> : vector<2x128xf32>
    %117 = tpu.matmul %116, %10, %cst_25 {dimension_numbers = #tpu.dot_dimension_numbers<[1], [0], [0], [1], [0, 0, 1, 1], [], []>} : vector<2x32xbf16>, vector<32x128xbf16>, vector<2x128xf32> -> vector<2x128xf32>
    %118 = arith.addf %115, %117 : vector<2x128xf32>
    %119 = arith.addf %118, %4 : vector<2x128xf32>
    %120 = arith.negf %119 : vector<2x128xf32>
    %121 = math.exp %120 : vector<2x128xf32>
    %cst_26 = arith.constant 1.000000e+00 : f32
    %122 = vector.broadcast %cst_26 : f32 to vector<2x128xf32>
    %123 = arith.addf %122, %121 : vector<2x128xf32>
    %124 = arith.divf %122, %123 : vector<2x128xf32>
    %125 = vector.extract_strided_slice %124 {offsets = [0, 0], sizes = [2, 32], strides = [1, 1]} : vector<2x128xf32> to vector<2x32xf32>
    %126 = vector.extract_strided_slice %124 {offsets = [0, 32], sizes = [2, 32], strides = [1, 1]} : vector<2x128xf32> to vector<2x32xf32>
    %127 = vector.extract_strided_slice %124 {offsets = [0, 96], sizes = [2, 32], strides = [1, 1]} : vector<2x128xf32> to vector<2x32xf32>
    %128 = vector.extract_strided_slice %119 {offsets = [0, 64], sizes = [2, 32], strides = [1, 1]} : vector<2x128xf32> to vector<2x32xf32>
    %129 = math.tanh %128 : vector<2x32xf32>
    %130 = arith.mulf %126, %71 : vector<2x32xf32>
    %131 = arith.mulf %125, %129 : vector<2x32xf32>
    %132 = arith.addf %130, %131 : vector<2x32xf32>
    %133 = math.tanh %132 : vector<2x32xf32>
    %134 = arith.mulf %127, %133 : vector<2x32xf32>
    %135 = vector.extract_strided_slice %2 {offsets = [0, 256], sizes = [2, 128], strides = [1, 1]} : vector<2x1408xf32> to vector<2x128xf32>
    %136 = arith.truncf %92 : vector<2x32xf32> to vector<2x32xbf16>
    %cst_27 = arith.constant dense<0.000000e+00> : vector<2x128xf32>
    %137 = tpu.matmul %136, %6, %cst_27 {dimension_numbers = #tpu.dot_dimension_numbers<[1], [0], [0], [1], [0, 0, 1, 1], [], []>} : vector<2x32xbf16>, vector<32x128xbf16>, vector<2x128xf32> -> vector<2x128xf32>
    %138 = arith.addf %135, %137 : vector<2x128xf32>
    %139 = arith.negf %138 : vector<2x128xf32>
    %140 = math.exp %139 : vector<2x128xf32>
    %cst_28 = arith.constant 1.000000e+00 : f32
    %141 = vector.broadcast %cst_28 : f32 to vector<2x128xf32>
    %142 = arith.addf %141, %140 : vector<2x128xf32>
    %143 = arith.divf %141, %142 : vector<2x128xf32>
    %144 = vector.extract_strided_slice %143 {offsets = [0, 0], sizes = [2, 32], strides = [1, 1]} : vector<2x128xf32> to vector<2x32xf32>
    %145 = vector.extract_strided_slice %143 {offsets = [0, 32], sizes = [2, 32], strides = [1, 1]} : vector<2x128xf32> to vector<2x32xf32>
    %146 = vector.extract_strided_slice %143 {offsets = [0, 96], sizes = [2, 32], strides = [1, 1]} : vector<2x128xf32> to vector<2x32xf32>
    %147 = vector.extract_strided_slice %138 {offsets = [0, 64], sizes = [2, 32], strides = [1, 1]} : vector<2x128xf32> to vector<2x32xf32>
    %148 = math.tanh %147 : vector<2x32xf32>
    %149 = arith.mulf %145, %90 : vector<2x32xf32>
    %150 = arith.mulf %144, %148 : vector<2x32xf32>
    %151 = arith.addf %149, %150 : vector<2x32xf32>
    %152 = math.tanh %151 : vector<2x32xf32>
    %153 = arith.mulf %146, %152 : vector<2x32xf32>
    %154 = arith.truncf %153 : vector<2x32xf32> to vector<2x32xbf16>
    %cst_29 = arith.constant dense<0.000000e+00> : vector<2x128xf32>
    %155 = tpu.matmul %154, %7, %cst_29 {dimension_numbers = #tpu.dot_dimension_numbers<[1], [0], [0], [1], [0, 0, 1, 1], [], []>} : vector<2x32xbf16>, vector<32x128xbf16>, vector<2x128xf32> -> vector<2x128xf32>
    %156 = arith.truncf %113 : vector<2x32xf32> to vector<2x32xbf16>
    %cst_30 = arith.constant dense<0.000000e+00> : vector<2x128xf32>
    %157 = tpu.matmul %156, %8, %cst_30 {dimension_numbers = #tpu.dot_dimension_numbers<[1], [0], [0], [1], [0, 0, 1, 1], [], []>} : vector<2x32xbf16>, vector<32x128xbf16>, vector<2x128xf32> -> vector<2x128xf32>
    %158 = arith.addf %155, %157 : vector<2x128xf32>
    %159 = arith.addf %158, %3 : vector<2x128xf32>
    %160 = arith.negf %159 : vector<2x128xf32>
    %161 = math.exp %160 : vector<2x128xf32>
    %cst_31 = arith.constant 1.000000e+00 : f32
    %162 = vector.broadcast %cst_31 : f32 to vector<2x128xf32>
    %163 = arith.addf %162, %161 : vector<2x128xf32>
    %164 = arith.divf %162, %163 : vector<2x128xf32>
    %165 = vector.extract_strided_slice %164 {offsets = [0, 0], sizes = [2, 32], strides = [1, 1]} : vector<2x128xf32> to vector<2x32xf32>
    %166 = vector.extract_strided_slice %164 {offsets = [0, 32], sizes = [2, 32], strides = [1, 1]} : vector<2x128xf32> to vector<2x32xf32>
    %167 = vector.extract_strided_slice %164 {offsets = [0, 96], sizes = [2, 32], strides = [1, 1]} : vector<2x128xf32> to vector<2x32xf32>
    %168 = vector.extract_strided_slice %159 {offsets = [0, 64], sizes = [2, 32], strides = [1, 1]} : vector<2x128xf32> to vector<2x32xf32>
    %169 = math.tanh %168 : vector<2x32xf32>
    %170 = arith.mulf %166, %111 : vector<2x32xf32>
    %171 = arith.mulf %165, %169 : vector<2x32xf32>
    %172 = arith.addf %170, %171 : vector<2x32xf32>
    %173 = math.tanh %172 : vector<2x32xf32>
    %174 = arith.mulf %167, %173 : vector<2x32xf32>
    %175 = arith.truncf %174 : vector<2x32xf32> to vector<2x32xbf16>
    %cst_32 = arith.constant dense<0.000000e+00> : vector<2x128xf32>
    %176 = tpu.matmul %175, %9, %cst_32 {dimension_numbers = #tpu.dot_dimension_numbers<[1], [0], [0], [1], [0, 0, 1, 1], [], []>} : vector<2x32xbf16>, vector<32x128xbf16>, vector<2x128xf32> -> vector<2x128xf32>
    %177 = arith.truncf %134 : vector<2x32xf32> to vector<2x32xbf16>
    %cst_33 = arith.constant dense<0.000000e+00> : vector<2x128xf32>
    %178 = tpu.matmul %177, %10, %cst_33 {dimension_numbers = #tpu.dot_dimension_numbers<[1], [0], [0], [1], [0, 0, 1, 1], [], []>} : vector<2x32xbf16>, vector<32x128xbf16>, vector<2x128xf32> -> vector<2x128xf32>
    %179 = arith.addf %176, %178 : vector<2x128xf32>
    %180 = arith.addf %179, %4 : vector<2x128xf32>
    %181 = arith.negf %180 : vector<2x128xf32>
    %182 = math.exp %181 : vector<2x128xf32>
    %cst_34 = arith.constant 1.000000e+00 : f32
    %183 = vector.broadcast %cst_34 : f32 to vector<2x128xf32>
    %184 = arith.addf %183, %182 : vector<2x128xf32>
    %185 = arith.divf %183, %184 : vector<2x128xf32>
    %186 = vector.extract_strided_slice %185 {offsets = [0, 0], sizes = [2, 32], strides = [1, 1]} : vector<2x128xf32> to vector<2x32xf32>
    %187 = vector.extract_strided_slice %185 {offsets = [0, 32], sizes = [2, 32], strides = [1, 1]} : vector<2x128xf32> to vector<2x32xf32>
    %188 = vector.extract_strided_slice %185 {offsets = [0, 96], sizes = [2, 32], strides = [1, 1]} : vector<2x128xf32> to vector<2x32xf32>
    %189 = vector.extract_strided_slice %180 {offsets = [0, 64], sizes = [2, 32], strides = [1, 1]} : vector<2x128xf32> to vector<2x32xf32>
    %190 = math.tanh %189 : vector<2x32xf32>
    %191 = arith.mulf %187, %132 : vector<2x32xf32>
    %192 = arith.mulf %186, %190 : vector<2x32xf32>
    %193 = arith.addf %191, %192 : vector<2x32xf32>
    %194 = math.tanh %193 : vector<2x32xf32>
    %195 = arith.mulf %188, %194 : vector<2x32xf32>
    %196 = vector.extract_strided_slice %2 {offsets = [0, 384], sizes = [2, 128], strides = [1, 1]} : vector<2x1408xf32> to vector<2x128xf32>
    %197 = arith.truncf %153 : vector<2x32xf32> to vector<2x32xbf16>
    %cst_35 = arith.constant dense<0.000000e+00> : vector<2x128xf32>
    %198 = tpu.matmul %197, %6, %cst_35 {dimension_numbers = #tpu.dot_dimension_numbers<[1], [0], [0], [1], [0, 0, 1, 1], [], []>} : vector<2x32xbf16>, vector<32x128xbf16>, vector<2x128xf32> -> vector<2x128xf32>
    %199 = arith.addf %196, %198 : vector<2x128xf32>
    %200 = arith.negf %199 : vector<2x128xf32>
    %201 = math.exp %200 : vector<2x128xf32>
    %cst_36 = arith.constant 1.000000e+00 : f32
    %202 = vector.broadcast %cst_36 : f32 to vector<2x128xf32>
    %203 = arith.addf %202, %201 : vector<2x128xf32>
    %204 = arith.divf %202, %203 : vector<2x128xf32>
    %205 = vector.extract_strided_slice %204 {offsets = [0, 0], sizes = [2, 32], strides = [1, 1]} : vector<2x128xf32> to vector<2x32xf32>
    %206 = vector.extract_strided_slice %204 {offsets = [0, 32], sizes = [2, 32], strides = [1, 1]} : vector<2x128xf32> to vector<2x32xf32>
    %207 = vector.extract_strided_slice %204 {offsets = [0, 96], sizes = [2, 32], strides = [1, 1]} : vector<2x128xf32> to vector<2x32xf32>
    %208 = vector.extract_strided_slice %199 {offsets = [0, 64], sizes = [2, 32], strides = [1, 1]} : vector<2x128xf32> to vector<2x32xf32>
    %209 = math.tanh %208 : vector<2x32xf32>
    %210 = arith.mulf %206, %151 : vector<2x32xf32>
    %211 = arith.mulf %205, %209 : vector<2x32xf32>
    %212 = arith.addf %210, %211 : vector<2x32xf32>
    %213 = math.tanh %212 : vector<2x32xf32>
    %214 = arith.mulf %207, %213 : vector<2x32xf32>
    %215 = arith.truncf %214 : vector<2x32xf32> to vector<2x32xbf16>
    %cst_37 = arith.constant dense<0.000000e+00> : vector<2x128xf32>
    %216 = tpu.matmul %215, %7, %cst_37 {dimension_numbers = #tpu.dot_dimension_numbers<[1], [0], [0], [1], [0, 0, 1, 1], [], []>} : vector<2x32xbf16>, vector<32x128xbf16>, vector<2x128xf32> -> vector<2x128xf32>
    %217 = arith.truncf %174 : vector<2x32xf32> to vector<2x32xbf16>
    %cst_38 = arith.constant dense<0.000000e+00> : vector<2x128xf32>
    %218 = tpu.matmul %217, %8, %cst_38 {dimension_numbers = #tpu.dot_dimension_numbers<[1], [0], [0], [1], [0, 0, 1, 1], [], []>} : vector<2x32xbf16>, vector<32x128xbf16>, vector<2x128xf32> -> vector<2x128xf32>
    %219 = arith.addf %216, %218 : vector<2x128xf32>
    %220 = arith.addf %219, %3 : vector<2x128xf32>
    %221 = arith.negf %220 : vector<2x128xf32>
    %222 = math.exp %221 : vector<2x128xf32>
    %cst_39 = arith.constant 1.000000e+00 : f32
    %223 = vector.broadcast %cst_39 : f32 to vector<2x128xf32>
    %224 = arith.addf %223, %222 : vector<2x128xf32>
    %225 = arith.divf %223, %224 : vector<2x128xf32>
    %226 = vector.extract_strided_slice %225 {offsets = [0, 0], sizes = [2, 32], strides = [1, 1]} : vector<2x128xf32> to vector<2x32xf32>
    %227 = vector.extract_strided_slice %225 {offsets = [0, 32], sizes = [2, 32], strides = [1, 1]} : vector<2x128xf32> to vector<2x32xf32>
    %228 = vector.extract_strided_slice %225 {offsets = [0, 96], sizes = [2, 32], strides = [1, 1]} : vector<2x128xf32> to vector<2x32xf32>
    %229 = vector.extract_strided_slice %220 {offsets = [0, 64], sizes = [2, 32], strides = [1, 1]} : vector<2x128xf32> to vector<2x32xf32>
    %230 = math.tanh %229 : vector<2x32xf32>
    %231 = arith.mulf %227, %172 : vector<2x32xf32>
    %232 = arith.mulf %226, %230 : vector<2x32xf32>
    %233 = arith.addf %231, %232 : vector<2x32xf32>
    %234 = math.tanh %233 : vector<2x32xf32>
    %235 = arith.mulf %228, %234 : vector<2x32xf32>
    %236 = arith.truncf %235 : vector<2x32xf32> to vector<2x32xbf16>
    %cst_40 = arith.constant dense<0.000000e+00> : vector<2x128xf32>
    %237 = tpu.matmul %236, %9, %cst_40 {dimension_numbers = #tpu.dot_dimension_numbers<[1], [0], [0], [1], [0, 0, 1, 1], [], []>} : vector<2x32xbf16>, vector<32x128xbf16>, vector<2x128xf32> -> vector<2x128xf32>
    %238 = arith.truncf %195 : vector<2x32xf32> to vector<2x32xbf16>
    %cst_41 = arith.constant dense<0.000000e+00> : vector<2x128xf32>
    %239 = tpu.matmul %238, %10, %cst_41 {dimension_numbers = #tpu.dot_dimension_numbers<[1], [0], [0], [1], [0, 0, 1, 1], [], []>} : vector<2x32xbf16>, vector<32x128xbf16>, vector<2x128xf32> -> vector<2x128xf32>
    %240 = arith.addf %237, %239 : vector<2x128xf32>
    %241 = arith.addf %240, %4 : vector<2x128xf32>
    %242 = arith.negf %241 : vector<2x128xf32>
    %243 = math.exp %242 : vector<2x128xf32>
    %cst_42 = arith.constant 1.000000e+00 : f32
    %244 = vector.broadcast %cst_42 : f32 to vector<2x128xf32>
    %245 = arith.addf %244, %243 : vector<2x128xf32>
    %246 = arith.divf %244, %245 : vector<2x128xf32>
    %247 = vector.extract_strided_slice %246 {offsets = [0, 0], sizes = [2, 32], strides = [1, 1]} : vector<2x128xf32> to vector<2x32xf32>
    %248 = vector.extract_strided_slice %246 {offsets = [0, 32], sizes = [2, 32], strides = [1, 1]} : vector<2x128xf32> to vector<2x32xf32>
    %249 = vector.extract_strided_slice %246 {offsets = [0, 96], sizes = [2, 32], strides = [1, 1]} : vector<2x128xf32> to vector<2x32xf32>
    %250 = vector.extract_strided_slice %241 {offsets = [0, 64], sizes = [2, 32], strides = [1, 1]} : vector<2x128xf32> to vector<2x32xf32>
    %251 = math.tanh %250 : vector<2x32xf32>
    %252 = arith.mulf %248, %193 : vector<2x32xf32>
    %253 = arith.mulf %247, %251 : vector<2x32xf32>
    %254 = arith.addf %252, %253 : vector<2x32xf32>
    %255 = math.tanh %254 : vector<2x32xf32>
    %256 = arith.mulf %249, %255 : vector<2x32xf32>
    %257 = vector.extract_strided_slice %2 {offsets = [0, 512], sizes = [2, 128], strides = [1, 1]} : vector<2x1408xf32> to vector<2x128xf32>
    %258 = arith.truncf %214 : vector<2x32xf32> to vector<2x32xbf16>
    %cst_43 = arith.constant dense<0.000000e+00> : vector<2x128xf32>
    %259 = tpu.matmul %258, %6, %cst_43 {dimension_numbers = #tpu.dot_dimension_numbers<[1], [0], [0], [1], [0, 0, 1, 1], [], []>} : vector<2x32xbf16>, vector<32x128xbf16>, vector<2x128xf32> -> vector<2x128xf32>
    %260 = arith.addf %257, %259 : vector<2x128xf32>
    %261 = arith.negf %260 : vector<2x128xf32>
    %262 = math.exp %261 : vector<2x128xf32>
    %cst_44 = arith.constant 1.000000e+00 : f32
    %263 = vector.broadcast %cst_44 : f32 to vector<2x128xf32>
    %264 = arith.addf %263, %262 : vector<2x128xf32>
    %265 = arith.divf %263, %264 : vector<2x128xf32>
    %266 = vector.extract_strided_slice %265 {offsets = [0, 0], sizes = [2, 32], strides = [1, 1]} : vector<2x128xf32> to vector<2x32xf32>
    %267 = vector.extract_strided_slice %265 {offsets = [0, 32], sizes = [2, 32], strides = [1, 1]} : vector<2x128xf32> to vector<2x32xf32>
    %268 = vector.extract_strided_slice %265 {offsets = [0, 96], sizes = [2, 32], strides = [1, 1]} : vector<2x128xf32> to vector<2x32xf32>
    %269 = vector.extract_strided_slice %260 {offsets = [0, 64], sizes = [2, 32], strides = [1, 1]} : vector<2x128xf32> to vector<2x32xf32>
    %270 = math.tanh %269 : vector<2x32xf32>
    %271 = arith.mulf %267, %212 : vector<2x32xf32>
    %272 = arith.mulf %266, %270 : vector<2x32xf32>
    %273 = arith.addf %271, %272 : vector<2x32xf32>
    %274 = math.tanh %273 : vector<2x32xf32>
    %275 = arith.mulf %268, %274 : vector<2x32xf32>
    %276 = arith.truncf %275 : vector<2x32xf32> to vector<2x32xbf16>
    %cst_45 = arith.constant dense<0.000000e+00> : vector<2x128xf32>
    %277 = tpu.matmul %276, %7, %cst_45 {dimension_numbers = #tpu.dot_dimension_numbers<[1], [0], [0], [1], [0, 0, 1, 1], [], []>} : vector<2x32xbf16>, vector<32x128xbf16>, vector<2x128xf32> -> vector<2x128xf32>
    %278 = arith.truncf %235 : vector<2x32xf32> to vector<2x32xbf16>
    %cst_46 = arith.constant dense<0.000000e+00> : vector<2x128xf32>
    %279 = tpu.matmul %278, %8, %cst_46 {dimension_numbers = #tpu.dot_dimension_numbers<[1], [0], [0], [1], [0, 0, 1, 1], [], []>} : vector<2x32xbf16>, vector<32x128xbf16>, vector<2x128xf32> -> vector<2x128xf32>
    %280 = arith.addf %277, %279 : vector<2x128xf32>
    %281 = arith.addf %280, %3 : vector<2x128xf32>
    %282 = arith.negf %281 : vector<2x128xf32>
    %283 = math.exp %282 : vector<2x128xf32>
    %cst_47 = arith.constant 1.000000e+00 : f32
    %284 = vector.broadcast %cst_47 : f32 to vector<2x128xf32>
    %285 = arith.addf %284, %283 : vector<2x128xf32>
    %286 = arith.divf %284, %285 : vector<2x128xf32>
    %287 = vector.extract_strided_slice %286 {offsets = [0, 0], sizes = [2, 32], strides = [1, 1]} : vector<2x128xf32> to vector<2x32xf32>
    %288 = vector.extract_strided_slice %286 {offsets = [0, 32], sizes = [2, 32], strides = [1, 1]} : vector<2x128xf32> to vector<2x32xf32>
    %289 = vector.extract_strided_slice %286 {offsets = [0, 96], sizes = [2, 32], strides = [1, 1]} : vector<2x128xf32> to vector<2x32xf32>
    %290 = vector.extract_strided_slice %281 {offsets = [0, 64], sizes = [2, 32], strides = [1, 1]} : vector<2x128xf32> to vector<2x32xf32>
    %291 = math.tanh %290 : vector<2x32xf32>
    %292 = arith.mulf %288, %233 : vector<2x32xf32>
    %293 = arith.mulf %287, %291 : vector<2x32xf32>
    %294 = arith.addf %292, %293 : vector<2x32xf32>
    %295 = math.tanh %294 : vector<2x32xf32>
    %296 = arith.mulf %289, %295 : vector<2x32xf32>
    %297 = arith.truncf %296 : vector<2x32xf32> to vector<2x32xbf16>
    %cst_48 = arith.constant dense<0.000000e+00> : vector<2x128xf32>
    %298 = tpu.matmul %297, %9, %cst_48 {dimension_numbers = #tpu.dot_dimension_numbers<[1], [0], [0], [1], [0, 0, 1, 1], [], []>} : vector<2x32xbf16>, vector<32x128xbf16>, vector<2x128xf32> -> vector<2x128xf32>
    %299 = arith.truncf %256 : vector<2x32xf32> to vector<2x32xbf16>
    %cst_49 = arith.constant dense<0.000000e+00> : vector<2x128xf32>
    %300 = tpu.matmul %299, %10, %cst_49 {dimension_numbers = #tpu.dot_dimension_numbers<[1], [0], [0], [1], [0, 0, 1, 1], [], []>} : vector<2x32xbf16>, vector<32x128xbf16>, vector<2x128xf32> -> vector<2x128xf32>
    %301 = arith.addf %298, %300 : vector<2x128xf32>
    %302 = arith.addf %301, %4 : vector<2x128xf32>
    %303 = arith.negf %302 : vector<2x128xf32>
    %304 = math.exp %303 : vector<2x128xf32>
    %cst_50 = arith.constant 1.000000e+00 : f32
    %305 = vector.broadcast %cst_50 : f32 to vector<2x128xf32>
    %306 = arith.addf %305, %304 : vector<2x128xf32>
    %307 = arith.divf %305, %306 : vector<2x128xf32>
    %308 = vector.extract_strided_slice %307 {offsets = [0, 0], sizes = [2, 32], strides = [1, 1]} : vector<2x128xf32> to vector<2x32xf32>
    %309 = vector.extract_strided_slice %307 {offsets = [0, 32], sizes = [2, 32], strides = [1, 1]} : vector<2x128xf32> to vector<2x32xf32>
    %310 = vector.extract_strided_slice %307 {offsets = [0, 96], sizes = [2, 32], strides = [1, 1]} : vector<2x128xf32> to vector<2x32xf32>
    %311 = vector.extract_strided_slice %302 {offsets = [0, 64], sizes = [2, 32], strides = [1, 1]} : vector<2x128xf32> to vector<2x32xf32>
    %312 = math.tanh %311 : vector<2x32xf32>
    %313 = arith.mulf %309, %254 : vector<2x32xf32>
    %314 = arith.mulf %308, %312 : vector<2x32xf32>
    %315 = arith.addf %313, %314 : vector<2x32xf32>
    %316 = math.tanh %315 : vector<2x32xf32>
    %317 = arith.mulf %310, %316 : vector<2x32xf32>
    %318 = vector.extract_strided_slice %2 {offsets = [0, 640], sizes = [2, 128], strides = [1, 1]} : vector<2x1408xf32> to vector<2x128xf32>
    %319 = arith.truncf %275 : vector<2x32xf32> to vector<2x32xbf16>
    %cst_51 = arith.constant dense<0.000000e+00> : vector<2x128xf32>
    %320 = tpu.matmul %319, %6, %cst_51 {dimension_numbers = #tpu.dot_dimension_numbers<[1], [0], [0], [1], [0, 0, 1, 1], [], []>} : vector<2x32xbf16>, vector<32x128xbf16>, vector<2x128xf32> -> vector<2x128xf32>
    %321 = arith.addf %318, %320 : vector<2x128xf32>
    %322 = arith.negf %321 : vector<2x128xf32>
    %323 = math.exp %322 : vector<2x128xf32>
    %cst_52 = arith.constant 1.000000e+00 : f32
    %324 = vector.broadcast %cst_52 : f32 to vector<2x128xf32>
    %325 = arith.addf %324, %323 : vector<2x128xf32>
    %326 = arith.divf %324, %325 : vector<2x128xf32>
    %327 = vector.extract_strided_slice %326 {offsets = [0, 0], sizes = [2, 32], strides = [1, 1]} : vector<2x128xf32> to vector<2x32xf32>
    %328 = vector.extract_strided_slice %326 {offsets = [0, 32], sizes = [2, 32], strides = [1, 1]} : vector<2x128xf32> to vector<2x32xf32>
    %329 = vector.extract_strided_slice %326 {offsets = [0, 96], sizes = [2, 32], strides = [1, 1]} : vector<2x128xf32> to vector<2x32xf32>
    %330 = vector.extract_strided_slice %321 {offsets = [0, 64], sizes = [2, 32], strides = [1, 1]} : vector<2x128xf32> to vector<2x32xf32>
    %331 = math.tanh %330 : vector<2x32xf32>
    %332 = arith.mulf %328, %273 : vector<2x32xf32>
    %333 = arith.mulf %327, %331 : vector<2x32xf32>
    %334 = arith.addf %332, %333 : vector<2x32xf32>
    %335 = math.tanh %334 : vector<2x32xf32>
    %336 = arith.mulf %329, %335 : vector<2x32xf32>
    %337 = arith.truncf %336 : vector<2x32xf32> to vector<2x32xbf16>
    %cst_53 = arith.constant dense<0.000000e+00> : vector<2x128xf32>
    %338 = tpu.matmul %337, %7, %cst_53 {dimension_numbers = #tpu.dot_dimension_numbers<[1], [0], [0], [1], [0, 0, 1, 1], [], []>} : vector<2x32xbf16>, vector<32x128xbf16>, vector<2x128xf32> -> vector<2x128xf32>
    %339 = arith.truncf %296 : vector<2x32xf32> to vector<2x32xbf16>
    %cst_54 = arith.constant dense<0.000000e+00> : vector<2x128xf32>
    %340 = tpu.matmul %339, %8, %cst_54 {dimension_numbers = #tpu.dot_dimension_numbers<[1], [0], [0], [1], [0, 0, 1, 1], [], []>} : vector<2x32xbf16>, vector<32x128xbf16>, vector<2x128xf32> -> vector<2x128xf32>
    %341 = arith.addf %338, %340 : vector<2x128xf32>
    %342 = arith.addf %341, %3 : vector<2x128xf32>
    %343 = arith.negf %342 : vector<2x128xf32>
    %344 = math.exp %343 : vector<2x128xf32>
    %cst_55 = arith.constant 1.000000e+00 : f32
    %345 = vector.broadcast %cst_55 : f32 to vector<2x128xf32>
    %346 = arith.addf %345, %344 : vector<2x128xf32>
    %347 = arith.divf %345, %346 : vector<2x128xf32>
    %348 = vector.extract_strided_slice %347 {offsets = [0, 0], sizes = [2, 32], strides = [1, 1]} : vector<2x128xf32> to vector<2x32xf32>
    %349 = vector.extract_strided_slice %347 {offsets = [0, 32], sizes = [2, 32], strides = [1, 1]} : vector<2x128xf32> to vector<2x32xf32>
    %350 = vector.extract_strided_slice %347 {offsets = [0, 96], sizes = [2, 32], strides = [1, 1]} : vector<2x128xf32> to vector<2x32xf32>
    %351 = vector.extract_strided_slice %342 {offsets = [0, 64], sizes = [2, 32], strides = [1, 1]} : vector<2x128xf32> to vector<2x32xf32>
    %352 = math.tanh %351 : vector<2x32xf32>
    %353 = arith.mulf %349, %294 : vector<2x32xf32>
    %354 = arith.mulf %348, %352 : vector<2x32xf32>
    %355 = arith.addf %353, %354 : vector<2x32xf32>
    %356 = math.tanh %355 : vector<2x32xf32>
    %357 = arith.mulf %350, %356 : vector<2x32xf32>
    %358 = arith.truncf %357 : vector<2x32xf32> to vector<2x32xbf16>
    %cst_56 = arith.constant dense<0.000000e+00> : vector<2x128xf32>
    %359 = tpu.matmul %358, %9, %cst_56 {dimension_numbers = #tpu.dot_dimension_numbers<[1], [0], [0], [1], [0, 0, 1, 1], [], []>} : vector<2x32xbf16>, vector<32x128xbf16>, vector<2x128xf32> -> vector<2x128xf32>
    %360 = arith.truncf %317 : vector<2x32xf32> to vector<2x32xbf16>
    %cst_57 = arith.constant dense<0.000000e+00> : vector<2x128xf32>
    %361 = tpu.matmul %360, %10, %cst_57 {dimension_numbers = #tpu.dot_dimension_numbers<[1], [0], [0], [1], [0, 0, 1, 1], [], []>} : vector<2x32xbf16>, vector<32x128xbf16>, vector<2x128xf32> -> vector<2x128xf32>
    %362 = arith.addf %359, %361 : vector<2x128xf32>
    %363 = arith.addf %362, %4 : vector<2x128xf32>
    %364 = arith.negf %363 : vector<2x128xf32>
    %365 = math.exp %364 : vector<2x128xf32>
    %cst_58 = arith.constant 1.000000e+00 : f32
    %366 = vector.broadcast %cst_58 : f32 to vector<2x128xf32>
    %367 = arith.addf %366, %365 : vector<2x128xf32>
    %368 = arith.divf %366, %367 : vector<2x128xf32>
    %369 = vector.extract_strided_slice %368 {offsets = [0, 0], sizes = [2, 32], strides = [1, 1]} : vector<2x128xf32> to vector<2x32xf32>
    %370 = vector.extract_strided_slice %368 {offsets = [0, 32], sizes = [2, 32], strides = [1, 1]} : vector<2x128xf32> to vector<2x32xf32>
    %371 = vector.extract_strided_slice %368 {offsets = [0, 96], sizes = [2, 32], strides = [1, 1]} : vector<2x128xf32> to vector<2x32xf32>
    %372 = vector.extract_strided_slice %363 {offsets = [0, 64], sizes = [2, 32], strides = [1, 1]} : vector<2x128xf32> to vector<2x32xf32>
    %373 = math.tanh %372 : vector<2x32xf32>
    %374 = arith.mulf %370, %315 : vector<2x32xf32>
    %375 = arith.mulf %369, %373 : vector<2x32xf32>
    %376 = arith.addf %374, %375 : vector<2x32xf32>
    %377 = math.tanh %376 : vector<2x32xf32>
    %378 = arith.mulf %371, %377 : vector<2x32xf32>
    %379 = vector.extract_strided_slice %2 {offsets = [0, 768], sizes = [2, 128], strides = [1, 1]} : vector<2x1408xf32> to vector<2x128xf32>
    %380 = arith.truncf %336 : vector<2x32xf32> to vector<2x32xbf16>
    %cst_59 = arith.constant dense<0.000000e+00> : vector<2x128xf32>
    %381 = tpu.matmul %380, %6, %cst_59 {dimension_numbers = #tpu.dot_dimension_numbers<[1], [0], [0], [1], [0, 0, 1, 1], [], []>} : vector<2x32xbf16>, vector<32x128xbf16>, vector<2x128xf32> -> vector<2x128xf32>
    %382 = arith.addf %379, %381 : vector<2x128xf32>
    %383 = arith.negf %382 : vector<2x128xf32>
    %384 = math.exp %383 : vector<2x128xf32>
    %cst_60 = arith.constant 1.000000e+00 : f32
    %385 = vector.broadcast %cst_60 : f32 to vector<2x128xf32>
    %386 = arith.addf %385, %384 : vector<2x128xf32>
    %387 = arith.divf %385, %386 : vector<2x128xf32>
    %388 = vector.extract_strided_slice %387 {offsets = [0, 0], sizes = [2, 32], strides = [1, 1]} : vector<2x128xf32> to vector<2x32xf32>
    %389 = vector.extract_strided_slice %387 {offsets = [0, 32], sizes = [2, 32], strides = [1, 1]} : vector<2x128xf32> to vector<2x32xf32>
    %390 = vector.extract_strided_slice %387 {offsets = [0, 96], sizes = [2, 32], strides = [1, 1]} : vector<2x128xf32> to vector<2x32xf32>
    %391 = vector.extract_strided_slice %382 {offsets = [0, 64], sizes = [2, 32], strides = [1, 1]} : vector<2x128xf32> to vector<2x32xf32>
    %392 = math.tanh %391 : vector<2x32xf32>
    %393 = arith.mulf %389, %334 : vector<2x32xf32>
    %394 = arith.mulf %388, %392 : vector<2x32xf32>
    %395 = arith.addf %393, %394 : vector<2x32xf32>
    %396 = math.tanh %395 : vector<2x32xf32>
    %397 = arith.mulf %390, %396 : vector<2x32xf32>
    %398 = arith.truncf %397 : vector<2x32xf32> to vector<2x32xbf16>
    %cst_61 = arith.constant dense<0.000000e+00> : vector<2x128xf32>
    %399 = tpu.matmul %398, %7, %cst_61 {dimension_numbers = #tpu.dot_dimension_numbers<[1], [0], [0], [1], [0, 0, 1, 1], [], []>} : vector<2x32xbf16>, vector<32x128xbf16>, vector<2x128xf32> -> vector<2x128xf32>
    %400 = arith.truncf %357 : vector<2x32xf32> to vector<2x32xbf16>
    %cst_62 = arith.constant dense<0.000000e+00> : vector<2x128xf32>
    %401 = tpu.matmul %400, %8, %cst_62 {dimension_numbers = #tpu.dot_dimension_numbers<[1], [0], [0], [1], [0, 0, 1, 1], [], []>} : vector<2x32xbf16>, vector<32x128xbf16>, vector<2x128xf32> -> vector<2x128xf32>
    %402 = arith.addf %399, %401 : vector<2x128xf32>
    %403 = arith.addf %402, %3 : vector<2x128xf32>
    %404 = arith.negf %403 : vector<2x128xf32>
    %405 = math.exp %404 : vector<2x128xf32>
    %cst_63 = arith.constant 1.000000e+00 : f32
    %406 = vector.broadcast %cst_63 : f32 to vector<2x128xf32>
    %407 = arith.addf %406, %405 : vector<2x128xf32>
    %408 = arith.divf %406, %407 : vector<2x128xf32>
    %409 = vector.extract_strided_slice %408 {offsets = [0, 0], sizes = [2, 32], strides = [1, 1]} : vector<2x128xf32> to vector<2x32xf32>
    %410 = vector.extract_strided_slice %408 {offsets = [0, 32], sizes = [2, 32], strides = [1, 1]} : vector<2x128xf32> to vector<2x32xf32>
    %411 = vector.extract_strided_slice %408 {offsets = [0, 96], sizes = [2, 32], strides = [1, 1]} : vector<2x128xf32> to vector<2x32xf32>
    %412 = vector.extract_strided_slice %403 {offsets = [0, 64], sizes = [2, 32], strides = [1, 1]} : vector<2x128xf32> to vector<2x32xf32>
    %413 = math.tanh %412 : vector<2x32xf32>
    %414 = arith.mulf %410, %355 : vector<2x32xf32>
    %415 = arith.mulf %409, %413 : vector<2x32xf32>
    %416 = arith.addf %414, %415 : vector<2x32xf32>
    %417 = math.tanh %416 : vector<2x32xf32>
    %418 = arith.mulf %411, %417 : vector<2x32xf32>
    %419 = arith.truncf %418 : vector<2x32xf32> to vector<2x32xbf16>
    %cst_64 = arith.constant dense<0.000000e+00> : vector<2x128xf32>
    %420 = tpu.matmul %419, %9, %cst_64 {dimension_numbers = #tpu.dot_dimension_numbers<[1], [0], [0], [1], [0, 0, 1, 1], [], []>} : vector<2x32xbf16>, vector<32x128xbf16>, vector<2x128xf32> -> vector<2x128xf32>
    %421 = arith.truncf %378 : vector<2x32xf32> to vector<2x32xbf16>
    %cst_65 = arith.constant dense<0.000000e+00> : vector<2x128xf32>
    %422 = tpu.matmul %421, %10, %cst_65 {dimension_numbers = #tpu.dot_dimension_numbers<[1], [0], [0], [1], [0, 0, 1, 1], [], []>} : vector<2x32xbf16>, vector<32x128xbf16>, vector<2x128xf32> -> vector<2x128xf32>
    %423 = arith.addf %420, %422 : vector<2x128xf32>
    %424 = arith.addf %423, %4 : vector<2x128xf32>
    %425 = arith.negf %424 : vector<2x128xf32>
    %426 = math.exp %425 : vector<2x128xf32>
    %cst_66 = arith.constant 1.000000e+00 : f32
    %427 = vector.broadcast %cst_66 : f32 to vector<2x128xf32>
    %428 = arith.addf %427, %426 : vector<2x128xf32>
    %429 = arith.divf %427, %428 : vector<2x128xf32>
    %430 = vector.extract_strided_slice %429 {offsets = [0, 0], sizes = [2, 32], strides = [1, 1]} : vector<2x128xf32> to vector<2x32xf32>
    %431 = vector.extract_strided_slice %429 {offsets = [0, 32], sizes = [2, 32], strides = [1, 1]} : vector<2x128xf32> to vector<2x32xf32>
    %432 = vector.extract_strided_slice %429 {offsets = [0, 96], sizes = [2, 32], strides = [1, 1]} : vector<2x128xf32> to vector<2x32xf32>
    %433 = vector.extract_strided_slice %424 {offsets = [0, 64], sizes = [2, 32], strides = [1, 1]} : vector<2x128xf32> to vector<2x32xf32>
    %434 = math.tanh %433 : vector<2x32xf32>
    %435 = arith.mulf %431, %376 : vector<2x32xf32>
    %436 = arith.mulf %430, %434 : vector<2x32xf32>
    %437 = arith.addf %435, %436 : vector<2x32xf32>
    %438 = math.tanh %437 : vector<2x32xf32>
    %439 = arith.mulf %432, %438 : vector<2x32xf32>
    %440 = vector.extract_strided_slice %2 {offsets = [0, 896], sizes = [2, 128], strides = [1, 1]} : vector<2x1408xf32> to vector<2x128xf32>
    %441 = arith.truncf %397 : vector<2x32xf32> to vector<2x32xbf16>
    %cst_67 = arith.constant dense<0.000000e+00> : vector<2x128xf32>
    %442 = tpu.matmul %441, %6, %cst_67 {dimension_numbers = #tpu.dot_dimension_numbers<[1], [0], [0], [1], [0, 0, 1, 1], [], []>} : vector<2x32xbf16>, vector<32x128xbf16>, vector<2x128xf32> -> vector<2x128xf32>
    %443 = arith.addf %440, %442 : vector<2x128xf32>
    %444 = arith.negf %443 : vector<2x128xf32>
    %445 = math.exp %444 : vector<2x128xf32>
    %cst_68 = arith.constant 1.000000e+00 : f32
    %446 = vector.broadcast %cst_68 : f32 to vector<2x128xf32>
    %447 = arith.addf %446, %445 : vector<2x128xf32>
    %448 = arith.divf %446, %447 : vector<2x128xf32>
    %449 = vector.extract_strided_slice %448 {offsets = [0, 0], sizes = [2, 32], strides = [1, 1]} : vector<2x128xf32> to vector<2x32xf32>
    %450 = vector.extract_strided_slice %448 {offsets = [0, 32], sizes = [2, 32], strides = [1, 1]} : vector<2x128xf32> to vector<2x32xf32>
    %451 = vector.extract_strided_slice %448 {offsets = [0, 96], sizes = [2, 32], strides = [1, 1]} : vector<2x128xf32> to vector<2x32xf32>
    %452 = vector.extract_strided_slice %443 {offsets = [0, 64], sizes = [2, 32], strides = [1, 1]} : vector<2x128xf32> to vector<2x32xf32>
    %453 = math.tanh %452 : vector<2x32xf32>
    %454 = arith.mulf %450, %395 : vector<2x32xf32>
    %455 = arith.mulf %449, %453 : vector<2x32xf32>
    %456 = arith.addf %454, %455 : vector<2x32xf32>
    %457 = math.tanh %456 : vector<2x32xf32>
    %458 = arith.mulf %451, %457 : vector<2x32xf32>
    %459 = arith.truncf %458 : vector<2x32xf32> to vector<2x32xbf16>
    %cst_69 = arith.constant dense<0.000000e+00> : vector<2x128xf32>
    %460 = tpu.matmul %459, %7, %cst_69 {dimension_numbers = #tpu.dot_dimension_numbers<[1], [0], [0], [1], [0, 0, 1, 1], [], []>} : vector<2x32xbf16>, vector<32x128xbf16>, vector<2x128xf32> -> vector<2x128xf32>
    %461 = arith.truncf %418 : vector<2x32xf32> to vector<2x32xbf16>
    %cst_70 = arith.constant dense<0.000000e+00> : vector<2x128xf32>
    %462 = tpu.matmul %461, %8, %cst_70 {dimension_numbers = #tpu.dot_dimension_numbers<[1], [0], [0], [1], [0, 0, 1, 1], [], []>} : vector<2x32xbf16>, vector<32x128xbf16>, vector<2x128xf32> -> vector<2x128xf32>
    %463 = arith.addf %460, %462 : vector<2x128xf32>
    %464 = arith.addf %463, %3 : vector<2x128xf32>
    %465 = arith.negf %464 : vector<2x128xf32>
    %466 = math.exp %465 : vector<2x128xf32>
    %cst_71 = arith.constant 1.000000e+00 : f32
    %467 = vector.broadcast %cst_71 : f32 to vector<2x128xf32>
    %468 = arith.addf %467, %466 : vector<2x128xf32>
    %469 = arith.divf %467, %468 : vector<2x128xf32>
    %470 = vector.extract_strided_slice %469 {offsets = [0, 0], sizes = [2, 32], strides = [1, 1]} : vector<2x128xf32> to vector<2x32xf32>
    %471 = vector.extract_strided_slice %469 {offsets = [0, 32], sizes = [2, 32], strides = [1, 1]} : vector<2x128xf32> to vector<2x32xf32>
    %472 = vector.extract_strided_slice %469 {offsets = [0, 96], sizes = [2, 32], strides = [1, 1]} : vector<2x128xf32> to vector<2x32xf32>
    %473 = vector.extract_strided_slice %464 {offsets = [0, 64], sizes = [2, 32], strides = [1, 1]} : vector<2x128xf32> to vector<2x32xf32>
    %474 = math.tanh %473 : vector<2x32xf32>
    %475 = arith.mulf %471, %416 : vector<2x32xf32>
    %476 = arith.mulf %470, %474 : vector<2x32xf32>
    %477 = arith.addf %475, %476 : vector<2x32xf32>
    %478 = math.tanh %477 : vector<2x32xf32>
    %479 = arith.mulf %472, %478 : vector<2x32xf32>
    %480 = arith.truncf %479 : vector<2x32xf32> to vector<2x32xbf16>
    %cst_72 = arith.constant dense<0.000000e+00> : vector<2x128xf32>
    %481 = tpu.matmul %480, %9, %cst_72 {dimension_numbers = #tpu.dot_dimension_numbers<[1], [0], [0], [1], [0, 0, 1, 1], [], []>} : vector<2x32xbf16>, vector<32x128xbf16>, vector<2x128xf32> -> vector<2x128xf32>
    %482 = arith.truncf %439 : vector<2x32xf32> to vector<2x32xbf16>
    %cst_73 = arith.constant dense<0.000000e+00> : vector<2x128xf32>
    %483 = tpu.matmul %482, %10, %cst_73 {dimension_numbers = #tpu.dot_dimension_numbers<[1], [0], [0], [1], [0, 0, 1, 1], [], []>} : vector<2x32xbf16>, vector<32x128xbf16>, vector<2x128xf32> -> vector<2x128xf32>
    %484 = arith.addf %481, %483 : vector<2x128xf32>
    %485 = arith.addf %484, %4 : vector<2x128xf32>
    %486 = arith.negf %485 : vector<2x128xf32>
    %487 = math.exp %486 : vector<2x128xf32>
    %cst_74 = arith.constant 1.000000e+00 : f32
    %488 = vector.broadcast %cst_74 : f32 to vector<2x128xf32>
    %489 = arith.addf %488, %487 : vector<2x128xf32>
    %490 = arith.divf %488, %489 : vector<2x128xf32>
    %491 = vector.extract_strided_slice %490 {offsets = [0, 0], sizes = [2, 32], strides = [1, 1]} : vector<2x128xf32> to vector<2x32xf32>
    %492 = vector.extract_strided_slice %490 {offsets = [0, 32], sizes = [2, 32], strides = [1, 1]} : vector<2x128xf32> to vector<2x32xf32>
    %493 = vector.extract_strided_slice %490 {offsets = [0, 96], sizes = [2, 32], strides = [1, 1]} : vector<2x128xf32> to vector<2x32xf32>
    %494 = vector.extract_strided_slice %485 {offsets = [0, 64], sizes = [2, 32], strides = [1, 1]} : vector<2x128xf32> to vector<2x32xf32>
    %495 = math.tanh %494 : vector<2x32xf32>
    %496 = arith.mulf %492, %437 : vector<2x32xf32>
    %497 = arith.mulf %491, %495 : vector<2x32xf32>
    %498 = arith.addf %496, %497 : vector<2x32xf32>
    %499 = math.tanh %498 : vector<2x32xf32>
    %500 = arith.mulf %493, %499 : vector<2x32xf32>
    %501 = arith.truncf %500 : vector<2x32xf32> to vector<2x32xbf16>
    %cst_75 = arith.constant dense<0.000000e+00> : vector<2x128xf32>
    %502 = tpu.matmul %501, %11, %cst_75 {dimension_numbers = #tpu.dot_dimension_numbers<[1], [0], [0], [1], [0, 0, 1, 1], [], []>} : vector<2x32xbf16>, vector<32x128xbf16>, vector<2x128xf32> -> vector<2x128xf32>
    %503 = arith.addf %502, %5 : vector<2x128xf32>
    %c0_76 = arith.constant 0 : index
    %c0_77 = arith.constant 0 : index
    %504 = vector.load %arg3[%c0_76, %c0_77] : memref<2x128xf32, #tpu.memory_space<vmem>>, vector<2x128xf32>
    tpu.vector_store %arg3[%c0_76, %c0_77], %503 {strides = array<i32>} : memref<2x128xf32, #tpu.memory_space<vmem>>, vector<2x128xf32>,
    return
  }
}

</mosaic_0001>

<bundles_post_ra>
// kernel: tpu_custom_call.1
= control target key start
LH: loop header
LB: loop body
LE: loop exit
PB: predicated region body
PF: predicated region fallthrough
CT: control target
= control target key end

     0   :  { %8 = vsyncpa [#allocation3], 0  ;;  %s4670_s0 = inlined_call_operand.hbm [shape: f32[2,40], index: 0, kind: input, shape index: {}]   ;;  %s4671_s1 = inlined_call_operand.hbm [shape: f32[40,1408], index: 1, kind: input, shape index: {}]   ;;  %s4672_s2 = inlined_call_operand.hbm [shape: bf16[192,128], index: 2, kind: input, shape index: {}]   ;;  %s4673_s3 = inlined_call_operand.hbm [shape: f32[2,128], index: 3, kind: output, shape index: {}]  }
   0x1   :  { %9 = vsyncpa [#allocation6], 0 }
   0x2   :  { %10 = vsyncpa [#allocation4], 0  ;;  %s3982_s12 = smov [#allocation5]   ;;  %s3888_s16 = scalar_lea.hbm %s4671_s1, 7040 }
   0x3   :  { %s26_s13 = sshll.u32 %s3982_s12, 4  ;;  %p3889_p0 = scmp.ne.s32.totalorder %s4671_s1, %s3888_s16  ;;  %s27_s13 = int_to_ptr.vmem [resolvable:$true] %s26_s13 }
   0x4   :  { %p3892_p1 = scmp.lt.u32.totalorder %s3888_s16, %s4671_s1 }
   0x6   :  { %p3894_p2 = pnand %p3892_p1, %p3889_p0 }
   0x8   :  { %3897 = shalt.err (!%p3894_p2)
}
   0x9   :  { %s3898_s21 = scalar_lea.vmem %s27_s13, 7040  ;;  %p3903_p4 = scmp.lt.s32.totalorder %s27_s13, %s27_s13 }
   0xa   :  { %p3899_p3 = scmp.ne.s32.totalorder %s27_s13, %s3898_s21  ;;  %p3904_p5 = scmp.lt.s32.totalorder %s3898_s21, %s3898_s21 }
   0xc   :  { %p3905_p6 = por %p3904_p5, %p3903_p4 }
   0xe   :  { %p3906_p7 = pnand %p3905_p6, %p3899_p3 }
  0x10   :  { %3909 = shalt.err (!%p3906_p7)
}
  0x11   :  { %s3983_s22 = smov 1408   ;;  %s3984_s23 = smov 88  }
  0x12   :  { %32 = dma.hbm_to_vmem [thread:$0]  %s4671_s1, 7040, %s27_s13, [#allocation6], %s3983_s22, %s3983_s22, %s3984_s23  }
  0x13   :  { %s3985_s26 = smov [#allocation2]   ;;  %s3986_s28 = smov [#allocation7]  }
  0x14   :  { %s17_s27 = sshll.u32 %s3985_s26, 4  ;;  %s38_s29 = sshll.u32 %s3986_s28, 4  ;;  %s18_s27 = int_to_ptr.vmem [resolvable:$true] %s17_s27  ;;  %s39_s29 = int_to_ptr.vmem [resolvable:$true] %s38_s29 }
  0x15   :  { %s3910_s5 = scalar_lea.hbm %s4670_s0, 32 }
  0x16   :  { %p3911_p8 = scmp.ne.s32.totalorder %s4670_s0, %s3910_s5  ;;  %p3914_p9 = scmp.lt.u32.totalorder %s3910_s5, %s4670_s0 }
  0x18   :  { %p3916_p10 = pnand %p3914_p9, %p3911_p8 }
  0x1a   :  { %3919 = shalt.err (!%p3916_p10)
}
  0x1b   :  { %s3920_s1 = scalar_lea.vmem %s18_s27, 32  ;;  %p3925_p12 = scmp.lt.s32.totalorder %s18_s27, %s18_s27 }
  0x1c   :  { %p3921_p11 = scmp.ne.s32.totalorder %s18_s27, %s3920_s1  ;;  %p3926_p13 = scmp.lt.s32.totalorder %s3920_s1, %s3920_s1 }
  0x1e   :  { %p3927_p0 = por %p3926_p13, %p3925_p12 }
  0x20   :  { %p3928_p1 = pnand %p3927_p0, %p3921_p11 }
  0x22   :  { %3931 = shalt.err (!%p3928_p1)
}
  0x23   :  { %20 = dma.hbm_to_vmem [thread:$0]  %s4670_s0, 32, %s18_s27, [#allocation3]  }
  0x24   :  { %s3932_s14 = scalar_lea.hbm %s4672_s2, 1536 }
  0x25   :  { %p3933_p2 = scmp.ne.s32.totalorder %s4672_s2, %s3932_s14  ;;  %p3936_p3 = scmp.lt.u32.totalorder %s3932_s14, %s4672_s2 }
  0x27   :  { %p3938_p4 = pnand %p3936_p3, %p3933_p2 }
  0x29   :  { %3941 = shalt.err (!%p3938_p4)
}
  0x2a   :  { %s3942_s19 = scalar_lea.vmem %s39_s29, 1536  ;;  %p3947_p6 = scmp.lt.s32.totalorder %s39_s29, %s39_s29 }
  0x2b   :  { %p3943_p5 = scmp.ne.s32.totalorder %s39_s29, %s3942_s19  ;;  %p3948_p7 = scmp.lt.s32.totalorder %s3942_s19, %s3942_s19 }
  0x2d   :  { %p3949_p8 = por %p3948_p7, %p3947_p6 }
  0x2f   :  { %p3950_p9 = pnand %p3949_p8, %p3943_p5 }
  0x31   :  { %3953 = shalt.err (!%p3950_p9)
}
  0x32   :  { %s3987_s0 = smov 64   ;;  %s3988_s20 = smov 4  }
  0x33   :  { %44 = dma.hbm_to_vmem [thread:$0]  %s4672_s2, 1536, %s39_s29, [#allocation6], %s3987_s0, %s3987_s0, %s3988_s20  }
  0x34   :  { %3976 = dma.done.wait [#allocation3], 32  }
  0x35   :  { %3977 = vsyncadd [#allocation3], 4294967264 }
  0x36   :  { %3978 = dma.done.wait [#allocation6], 8576  }
  0x37   :  { %3979 = vsyncadd [#allocation6], 4294958720  ;;  %v3989_v0 = vmov 0.0   ;;  %v57_v1 = vld [vmem:[#allocation5 + $0x8] sm:$0xff]  ;;  %v68_v2 = vld [vmem:[#allocation5 + $0x60] sm:$0xff]  ;;  %vm111_vm0 = vcmask 326656  }
  0x38   :  { %179 = vmatprep.mubr.f32.mxu0 %v3989_v0  ;;  %250 = vmatprep.mubr.f32.mxu1 %v3989_v0  ;;  %v56_v3 = vld [vmem:[#allocation5] sm:$0xff]  ;;  %v3615_v4 = vpack.c.bf16 %v68_v2, %v57_v1  ;;  %v67_v5 = vld [vmem:[#allocation5 + $0x58] sm:$0xff]  ;;  %v90_v7 = vld [vmem:[#allocation5 + $0x110] sm:$0xff]  ;;  %vm3990_vm1 = vmmov 0   ;;  %v3991_v46 = vmov 0   ;;  %s3992_s2 = smov 32  }
  0x39   :  { %v79_v6 = vld [vmem:[#allocation5 + $0xb8] sm:$0xff]  ;;  %v3617_v8 = vpack.c.bf16 %v67_v5, %v56_v3  ;;  %v78_v10 = vld [vmem:[#allocation5 + $0xb0] sm:$0xff]  ;;  %v89_v11 = vld [vmem:[#allocation5 + $0x108] sm:$0xff]  ;;  %vm576_vm2 = vcmask 261120   ;;  %s3994_s23 = smov [#allocation8]  }
  0x3a   :  { %v3619_v9 = vpack.c.bf16 %v90_v7, %v79_v6  ;;  %3616 = vmatprep.subr.bf16.mxu0 %v3615_v4  ;;  %v3621_v12 = vpack.c.bf16 %v89_v11, %v78_v10  ;;  %v101_v13 = vld [vmem:[#allocation5 + $0x168] sm:$0xff]  ;;  %v72_v15 = vld [vmem:[#allocation5 + $0x80] sm:$0xff]  ;;  %v71_v17 = vld [vmem:[#allocation5 + $0x78] sm:$0xff]  ;;  %s3055_s24 = sshll.u32 %s3994_s23, 4  ;;  %s3056_s24 = int_to_ptr.vmem [resolvable:$true] %s3055_s24 }
  0x3b   :  { %3618 = vmatpush1.bf16.msra.mxu0 %v3617_v8  ;;  %v61_v14 = vld [vmem:[#allocation5 + $0x28] sm:$0xff]  ;;  %v60_v16 = vld [vmem:[#allocation5 + $0x20] sm:$0xff]  ;;  %v83_v18 = vld [vmem:[#allocation5 + $0xd8] sm:$0xff]  ;;  %s3954_s25 = scalar_lea.vmem %s3056_s24, 32  ;;  %p3959_p11 = scmp.lt.s32.totalorder %s3056_s24, %s3056_s24 }
  0x3c   :  { %3620 = vmatprep.subr.bf16.mxu0 %v3619_v9  ;;  %v94_v19 = vld [vmem:[#allocation5 + $0x130] sm:$0xff]  ;;  %v100_v20 = vld [vmem:[#allocation5 + $0x160] sm:$0xff]  ;;  %v4055_v21 = vld [vmem:[#allocation2] sm:$0x3]  ;;  %v3631_v22 = vpack.c.bf16 %v72_v15, %v61_v14  ;;  %v3633_v23 = vpack.c.bf16 %v71_v17, %v60_v16  ;;  %p3955_p10 = scmp.ne.s32.totalorder %s3056_s24, %s3954_s25  ;;  %p3960_p12 = scmp.lt.s32.totalorder %s3954_s25, %s3954_s25 }
  0x3d   :  { %v82_v24 = vld [vmem:[#allocation5 + $0xd0] sm:$0xff]  ;;  %v3635_v25 = vpack.c.bf16 %v94_v19, %v83_v18  ;;  %v93_v26 = vld [vmem:[#allocation5 + $0x128] sm:$0xff]  ;;  %v76_v30 = vld [vmem:[#allocation5 + $0xa0] sm:$0xff] }
  0x3e   :  { %v3637_v27 = vpack.c.bf16 %v93_v26, %v82_v24  ;;  %v105_v28 = vld [vmem:[#allocation5 + $0x188] sm:$0xff]  ;;  %v64_v31 = vld [vmem:[#allocation5 + $0x40] sm:$0xff]  ;;  %v75_v32 = vld [vmem:[#allocation5 + $0x98] sm:$0xff]  ;;  %p3961_p13 = por %p3960_p12, %p3959_p11 }
  0x3f   :  { %3622 = vmatpush1.bf16.msra.mxu0 %v3621_v12  ;;  %v65_v29 = vld [vmem:[#allocation5 + $0x48] sm:$0xff]  ;;  %v87_v33 = vld [vmem:[#allocation5 + $0xf8] sm:$0xff]  ;;  %v98_v34 = vld [vmem:[#allocation5 + $0x150] sm:$0xff]  ;;  %v3649_v37 = vpack.c.bf16 %v75_v32, %v64_v31 }
  0x40   :  { %123 = vmatprep.subr.mxu0 %v101_v13  ;;  %v104_v35 = vld [vmem:[#allocation5 + $0x180] sm:$0xff]  ;;  %v3647_v36 = vpack.c.bf16 %v76_v30, %v65_v29  ;;  %v3651_v38 = vpack.c.bf16 %v98_v34, %v87_v33  ;;  %v86_v39 = vld [vmem:[#allocation5 + $0xf0] sm:$0xff]  ;;  %v97_v40 = vld [vmem:[#allocation5 + $0x148] sm:$0xff]  ;;  %p3962_p0 = pnand %p3961_p13, %p3955_p10 }
  0x41   :  { %v3653_v41 = vpack.c.bf16 %v97_v40, %v86_v39  ;;  %v109_v42 = vld [vmem:[#allocation5 + $0x1a8] sm:$0xff]  ;;  %v108_v43 = vld [vmem:[#allocation5 + $0x1a0] sm:$0xff]  ;;  %v4063_v44 = vld [vmem:[#allocation7] sm:$0xff]  }
  0x42   :  { %v4069_v45 = vld [vmem:[#allocation7 + $0x8] sm:$0xff]   ;;  %v59_v5 = vld [vmem:[#allocation5 + $0x18] sm:$0xff]  ;;  %v70_v6 = vld [vmem:[#allocation5 + $0x70] sm:$0xff] }
  0x43   :  { %124 = vmatpush1.msra.mxu0 %v100_v20  ;;  %v58_v7 = vld [vmem:[#allocation5 + $0x10] sm:$0xff]  ;;  %v3623_v8 = vpack.c.bf16 %v70_v6, %v59_v5  ;;  %v69_v9 = vld [vmem:[#allocation5 + $0x68] sm:$0xff]  ;;  %v92_v11 = vld [vmem:[#allocation5 + $0x120] sm:$0xff] }
  0x44   :  { %3065 = vmatmul.mubr.msk.f32.vlgmr.msra.gmra.mrb[0].mxu0 %vm111_vm0, %v4055_v21  ;;  %3632 = vmatprep.subr.bf16.mxu0 %v3631_v22  ;;  %v81_v10 = vld [vmem:[#allocation5 + $0xc8] sm:$0xff]  ;;  %v3625_v12 = vpack.c.bf16 %v69_v9, %v58_v7  ;;  %v80_v14 = vld [vmem:[#allocation5 + $0xc0] sm:$0xff]  ;;  %v91_v15 = vld [vmem:[#allocation5 + $0x118] sm:$0xff] }
  0x45   :  { %3634 = vmatpush1.bf16.msra.mxu0 %v3633_v23  ;;  %321 = vmatprep.mubr.f32.mxu0 %v3989_v0  ;;  %v3627_v13 = vpack.c.bf16 %v92_v11, %v81_v10  ;;  %v3629_v16 = vpack.c.bf16 %v91_v15, %v80_v14  ;;  %v103_v17 = vld [vmem:[#allocation5 + $0x178] sm:$0xff]  ;;  %v74_v19 = vld [vmem:[#allocation5 + $0x90] sm:$0xff]  ;;  %v73_v22 = vld [vmem:[#allocation5 + $0x88] sm:$0xff] }
  0x46   :  { %3636 = vmatprep.subr.bf16.mxu0 %v3635_v25  ;;  %3624 = vmatprep.subr.bf16.mxu1 %v3623_v8  ;;  %v63_v18 = vld [vmem:[#allocation5 + $0x38] sm:$0xff]  ;;  %v62_v20 = vld [vmem:[#allocation5 + $0x30] sm:$0xff]  ;;  %v85_v24 = vld [vmem:[#allocation5 + $0xe8] sm:$0xff] }
  0x47   :  { %3626 = vmatpush1.bf16.msra.mxu1 %v3625_v12  ;;  %v96_v25 = vld [vmem:[#allocation5 + $0x140] sm:$0xff]  ;;  %v102_v26 = vld [vmem:[#allocation5 + $0x170] sm:$0xff]  ;;  %v3641_v29 = vpack.c.bf16 %v73_v22, %v62_v20  ;;  %v95_v32 = vld [vmem:[#allocation5 + $0x138] sm:$0xff] }
  0x48   :  { %3628 = vmatprep.subr.bf16.mxu1 %v3627_v13  ;;  %v3643_v30 = vpack.c.bf16 %v96_v25, %v85_v24  ;;  %v84_v31 = vld [vmem:[#allocation5 + $0xe0] sm:$0xff]  ;;  %v4102_v33 = vld [vmem:[#allocation7 + $0x18] sm:$0xff]  }
  0x49   :  { %3638 = vmatpush1.bf16.msra.mxu0 %v3637_v27  ;;  %v3639_v27 = vpack.c.bf16 %v74_v19, %v63_v18  ;;  %v3645_v34 = vpack.c.bf16 %v95_v32, %v84_v31  ;;  %v88_v40 = vld [vmem:[#allocation5 + $0x100] sm:$0xff] }
  0x4a   :  { %265 = vmatprep.subr.mxu0 %v105_v28  ;;  %v4099_v28 = vld [vmem:[#allocation7 + $0x10] sm:$0xff]  }
  0x4b   :  { %3630 = vmatpush1.bf16.msra.mxu1 %v3629_v16 }
  0x4c   :  { %194 = vmatprep.subr.mxu1 %v103_v17 }
  0x4d   :  { %266 = vmatpush1.msra.mxu0 %v104_v35  ;;  %v107_v35 = vld [vmem:[#allocation5 + $0x198] sm:$0xff] }
  0x4e   :  { %3067 = vmatmul.mubr.msk.f32.vlgmr.msra.gmra.mrb[2].mxu0 %vm111_vm0, %v4055_v21  ;;  %3648 = vmatprep.subr.bf16.mxu0 %v3647_v36  ;;  %v66_v36 = vld [vmem:[#allocation5 + $0x50] sm:$0xff] }
  0x4f   :  { %3650 = vmatpush1.bf16.msra.mxu0 %v3649_v37  ;;  %463 = vmatprep.mubr.f32.mxu0 %v3989_v0  ;;  %v77_v37 = vld [vmem:[#allocation5 + $0xa8] sm:$0xff] }
  0x50   :  { %3652 = vmatprep.subr.bf16.mxu0 %v3651_v38  ;;  %195 = vmatpush1.msra.mxu1 %v102_v26  ;;  %v106_v38 = vld [vmem:[#allocation5 + $0x190] sm:$0xff]  ;;  %v3656_v39 = vpack.c.bf16 %v77_v37, %v66_v36 }
  0x51   :  { %3640 = vmatprep.subr.bf16.mxu1 %v3639_v27  ;;  %3066 = vmatmul.mubr.msk.f32.vlgmr.msra.gmra.mrb[0].mxu1 %vm111_vm0, %v4055_v21 }
  0x52   :  { %3642 = vmatpush1.bf16.msra.mxu1 %v3641_v29  ;;  %392 = vmatprep.mubr.f32.mxu1 %v3989_v0 }
  0x53   :  { %3654 = vmatpush1.bf16.msra.mxu0 %v3653_v41  ;;  %3644 = vmatprep.subr.bf16.mxu1 %v3643_v30  ;;  %v99_v41 = vld [vmem:[#allocation5 + $0x158] sm:$0xff] }
  0x54   :  { %407 = vmatprep.subr.mxu0 %v109_v42  ;;  %v3993_v42 = vmov 0.0|0.0  }
  0x56   :  { %3646 = vmatpush1.bf16.msra.mxu1 %v3645_v34 }
  0x57   :  { %408 = vmatpush1.msra.mxu0 %v108_v43  ;;  %336 = vmatprep.subr.mxu1 %v107_v35  ;;  %v3659_v43 = vpack.c.bf16 %v99_v41, %v88_v40 }
  0x58   :  { %3069 = vmatmul.mubr.msk.f32.vlgmr.msra.gmra.mrb[4].mxu0 %vm111_vm0, %v4055_v21  ;;  %3287 = vmatprep.subr.bf16.mxu0 %v3989_v0 }
  0x59   :  { %3288 = vmatpush3.bf16.msra.mxu0 %v4063_v44  ;;  %3291 = vmatprep.mubr.msk.bf16.mxu0 %vm3990_vm1, %v3989_v0 }
  0x5a   :  { %3289 = vmatprep.subr.bf16.mxu0 %v3989_v0  ;;  %337 = vmatpush1.msra.mxu1 %v106_v38 }
  0x5b   :  { %3655 = vmatprep.subr.bf16.mxu1 %v3993_v42  ;;  %3068 = vmatmul.mubr.msk.f32.vlgmr.msra.gmra.mrb[2].mxu1 %vm111_vm0, %v4055_v21 }
  0x5c   :  { %3657 = vmatpush3.bf16.msra.mxu1 %v3656_v39  ;;  %3284 = vmatprep.mubr.msk.f32.mxu1 %vm3990_vm1, %v3989_v0 }
  0x5d   :  { %3290 = vmatpush3.bf16.msra.mxu0 %v4069_v45  ;;  %3658 = vmatprep.subr.bf16.mxu1 %v3993_v42 }
  0x5e   :  { %3303 = vmatprep.subr.bf16.mxu0 %v3989_v0 }
  0x60   :  { %3292 = vmatmul.mubr.bf16.vlgmr.msra.gmra.mrb[8].mxu0 %v3991_v46  ;;  %3660 = vmatpush3.bf16.msra.mxu1 %v3659_v43 }
  0x61   :  { %3307 = vmatprep.mubr.msk.bf16.mxu0 %vm3990_vm1, %v3989_v0  ;;  %3304 = vmatpush3.bf16.msra.mxu0 %v4099_v28 }
  0x62   :  { %3305 = vmatprep.subr.bf16.mxu0 %v3989_v0  ;;  %3282 = vmatprep.subr.mxu1 %v3989_v0 }
  0x65   :  { %3306 = vmatpush3.bf16.msra.mxu0 %v4102_v33 }
  0x66   :  { %3319 = vmatprep.subr.bf16.mxu0 %v3989_v0 }
 0x117   :  { %v181_v47 = vpop.f32.mrb[0].mxu0 }
 0x118   :  { %v4079_v48 = vpop.f32.mrb[1].mxu0 }
 0x121   :  { %v4081_v49 = vpop.f32.mrb[2].mxu0 }
 0x122   :  { %v4083_v50 = vpop.f32.mrb[3].mxu0 }
 0x12b   :  { %v4085_v51 = vpop.f32.mrb[4].mxu0 }
 0x12c   :  { %v4087_v52 = vpop.f32.mrb[5].mxu0 }
 0x133   :  { %v614_v53 = vpop.f32.mrb[8].mxu0 }
 0x134   :  { %v620_v54 = vadd.f32 %v614_v53, %v181_v47  ;;  %v3293_v55 = vpop.f32.mrb[9].mxu0  ;;  %v110_v47 = vld [vmem:[#allocation5 + $0x1b0] sm:$0xff]  ;;  %v4115_v53 = vld [vmem:[#allocation7 + $0x20] sm:$0xff]  }
 0x135   :  { %v617_v56 = vpop.f32.mrb[10].mxu0  ;;  %3283 = vmatpush3.msra.mxu1 %v110_v47  ;;  %v4127_v55 = vld [vmem:[#allocation7 + $0x40] sm:$0xff]   ;;  %v4183_v47 = vld [vmem:[#allocation7 + $0x30] sm:$0xff]  }
 0x136   :  { %v3294_v57 = vpop.f32.mrb[11].mxu0  ;;  %3686 = vtanh.f32 %v620_v54  ;;  %v3073_v59 = vmul.f32 -1.442695, %v620_v54  ;;  %3295 = vmatprep.subr.bf16.mxu1 %v3989_v0  ;;  %3285 = vmatmul.mubr.msk.f32.vlgmr.msra.gmra.mrb[4].mxu1 %vm111_vm0, %v4055_v21  ;;  %v4121_v54 = vld [vmem:[#allocation7 + $0x28] sm:$0xff]  }
 0x137   :  { %3296 = vmatpush3.bf16.msra.mxu1 %v4115_v53  ;;  %3299 = vmatprep.mubr.msk.bf16.mxu1 %vm3990_vm1, %v3989_v0  ;;  %v4132_v21 = vld [vmem:[#allocation7 + $0x48] sm:$0xff]  }
 0x138   :  { %3688 = vpow2.f32 %v3073_v59  ;;  %3297 = vmatprep.subr.bf16.mxu1 %v3989_v0  ;;  %v4148_v59 = vpop.f32.mrb[0].mxu1 }
 0x13b   :  { %3298 = vmatpush3.bf16.msra.mxu1 %v4121_v54 }
 0x13c   :  { %3311 = vmatprep.subr.bf16.mxu1 %v3989_v0 }
 0x13e   :  { %3300 = vmatmul.mubr.bf16.vlgmr.msra.gmra.mrb[8].mxu1 %v3991_v46 }
 0x13f   :  { %3312 = vmatpush3.bf16.msra.mxu1 %v4127_v55  ;;  %3315 = vmatprep.mubr.msk.bf16.mxu1 %vm3990_vm1, %v3989_v0 }
 0x140   :  { %v3687_v58 = vpop.eup %3686  ;;  %3313 = vmatprep.subr.bf16.mxu1 %v3989_v0 }
 0x141   :  { %630 = vrot.lane.b32.xlu0 %v3687_v58, %s3987_s0 }
 0x142   :  { %v3689_v60 = vpop.eup %3688 }
 0x143   :  { %v624_v61 = vadd.f32 1.0, %v3689_v60  ;;  %3314 = vmatpush3.bf16.msra.mxu1 %v4132_v21 }
 0x144   :  { %3327 = vmatprep.subr.bf16.mxu1 %v3989_v0 }
 0x145   :  { %3690 = vrcp.f32 %v624_v61 }
 0x146   :  { %3316 = vmatmul.mubr.bf16.vlgmr.msra.gmra.mrb[12].mxu1 %v3991_v46  ;;  %v4150_v46 = vpop.f32.mrb[1].mxu1 }
 0x147   :  { %3328 = vmatpush3.bf16.msra.mxu1 %v4063_v44  ;;  %3331 = vmatprep.mubr.msk.bf16.mxu1 %vm3990_vm1, %v3989_v0  ;;  %v4152_v60 = vpop.f32.mrb[2].mxu1 }
 0x148   :  { %3329 = vmatprep.subr.bf16.mxu1 %v3989_v0  ;;  %v4154_v61 = vpop.f32.mrb[3].mxu1 }
 0x14b   :  { %3330 = vmatpush3.bf16.msra.mxu1 %v4069_v45 }
 0x14c   :  { %3343 = vmatprep.subr.bf16.mxu1 %v3989_v0 }
 0x14f   :  { %v4090_v62 = vpop.eup %3690 }
 0x150   :  { %v628_v2 = vmul.f32 0.0, %v4090_v62 }
 0x1b3   :  { %v631_v63 = vpop.permute.xlu0 %630 }
 0x1b4   :  { %v633_v1 = vmul.f32 %v4090_v62, %v631_v63 }
 0x1b6   :  { %635 = vrot.lane.b32.xlu0 %v633_v1, %s3992_s2 }
 0x209   :  { %v4158_v1 = vpop.f32.mrb[4].mxu1 }
 0x228   :  { %v636_v3 = vpop.permute.xlu0 %635 }
 0x229   :  { %v4095_v4 = vadd.f32 %v636_v3, %v628_v2 }
 0x22b   :  { %3692 = vtanh.f32 %v4095_v4 }
 0x235   :  { %v3693_v23 = vpop.eup %3692 }
 0x236   :  { %641 = vrot.lane.b32.xlu1 %v3693_v23, %s3987_s0 }
 0x2a8   :  { %v642_v56 = vpop.permute.xlu1 %641 }
 0x2a9   :  { %v644_v57 = vmul.f32 %v4090_v62, %v642_v56  ;;  %v3286_v62 = vpop.f32.mrb[5].mxu1  ;;  %v4186_v56 = vld [vmem:[#allocation7 + $0x38] sm:$0xff]  }
 0x2aa   :  { %v692_v2 = vpop.f32.mrb[8].mxu1 }
 0x2ab   :  { %v645_v58 = vpack.c.bf16 %v644_v57, %v644_v57  ;;  %v3301_v3 = vpop.f32.mrb[9].mxu1 }
 0x2ac   :  { %v695_v5 = vpop.f32.mrb[10].mxu1 }
 0x2ad   :  { %699 = vrot.lane.b32.xlu1 %v645_v58, %s3992_s2  ;;  %v3302_v6 = vpop.f32.mrb[11].mxu1 }
 0x2ae   :  { %v4168_v7 = vpop.f32.mrb[12].mxu1 }
 0x2af   :  { %v3317_v8 = vpop.f32.mrb[13].mxu1 }
 0x2b0   :  { %v831_v9 = vpop.f32.mrb[14].mxu1 }
 0x2b1   :  { %v3318_v10 = vpop.f32.mrb[15].mxu1 }
 0x31f   :  { %v700_v63 = vpop.permute.xlu1 %699 }
 0x320   :  { %3308 = vmatmul.mubr.msk.bf16.vlgmr.msra.gmra.mrb[12].mxu0 %vm576_vm2, %v700_v63  ;;  %3332 = vmatmul.mubr.msk.bf16.vlgmr.msra.gmra.mrb[16].mxu1 %vm576_vm2, %v700_v63 }
 0x321   :  { %3344 = vmatpush3.bf16.msra.mxu1 %v4099_v28  ;;  %3347 = vmatprep.mubr.msk.bf16.mxu1 %vm3990_vm1, %v3989_v0 }
 0x322   :  { %3345 = vmatprep.subr.bf16.mxu1 %v3989_v0  ;;  %3323 = vmatprep.mubr.msk.bf16.mxu0 %vm3990_vm1, %v3989_v0 }
 0x323   :  { %3320 = vmatpush3.bf16.msra.mxu0 %v4183_v47 }
 0x324   :  { %3321 = vmatprep.subr.bf16.mxu0 %v3989_v0 }
 0x325   :  { %3346 = vmatpush3.bf16.msra.mxu1 %v4102_v33 }
 0x326   :  { %3359 = vmatprep.subr.bf16.mxu1 %v3989_v0 }
 0x327   :  { %3322 = vmatpush3.bf16.msra.mxu0 %v4186_v56 }
 0x328   :  { %3335 = vmatprep.subr.bf16.mxu0 %v3989_v0 }
 0x3f3   :  { %v750_v11 = vpop.f32.mrb[12].mxu0  ;;  %v951_v12 = vpop.f32.mrb[16].mxu1 }
 0x3f4   :  { %v751_v13 = vadd.f32 %v750_v11, %v692_v2  ;;  %v957_v14 = vadd.f32 %v951_v12, %v4079_v48  ;;  %v3309_v15 = vpop.f32.mrb[13].mxu0  ;;  %v3333_v16 = vpop.f32.mrb[17].mxu1 }
 0x3f5   :  { %v753_v17 = vpop.f32.mrb[14].mxu0  ;;  %v954_v18 = vpop.f32.mrb[18].mxu1 }
 0x3f6   :  { %v756_v19 = vadd.f32 %v751_v13, %v4085_v51  ;;  %3694 = vtanh.f32 %v957_v14  ;;  %v3310_v20 = vpop.f32.mrb[15].mxu0  ;;  %v3334_v22 = vpop.f32.mrb[19].mxu1  ;;  %v3087_v25 = vmul.f32 -1.442695, %v957_v14 }
 0x3f8   :  { %3696 = vtanh.f32 %v756_v19  ;;  %v3079_v26 = vmul.f32 -1.442695, %v756_v19 }
 0x3f9   :  { %3698 = vpow2.f32 %v3087_v25 }
 0x3fa   :  { %3700 = vpow2.f32 %v3079_v26 }
 0x400   :  { %v3695_v23 = vpop.eup %3694 }
 0x401   :  { %967 = vrot.lane.b32.xlu1 %v3695_v23, %s3987_s0 }
 0x402   :  { %v3697_v24 = vpop.eup %3696 }
 0x403   :  { %766 = vrot.lane.b32.xlu0 %v3697_v24, %s3987_s0  ;;  %v3699_v48 = vpop.eup %3698 }
 0x404   :  { %v3701_v27 = vpop.eup %3700  ;;  %v961_v29 = vadd.f32 1.0, %v3699_v48 }
 0x405   :  { %v760_v30 = vadd.f32 1.0, %v3701_v27 }
 0x406   :  { %3702 = vrcp.f32 %v961_v29 }
 0x407   :  { %3704 = vrcp.f32 %v760_v30 }
 0x410   :  { %v3703_v31 = vpop.eup %3702 }
 0x411   :  { %v3705_v35 = vpop.eup %3704  ;;  %v965_v38 = vmul.f32 %v3703_v31, %v4095_v4 }
 0x412   :  { %v764_v41 = vmul.f32 0.0, %v3705_v35 }
 0x473   :  { %v968_v32 = vpop.permute.xlu1 %967 }
 0x474   :  { %v970_v34 = vmul.f32 %v3703_v31, %v968_v32 }
 0x475   :  { %v767_v36 = vpop.permute.xlu0 %766 }
 0x476   :  { %v769_v37 = vmul.f32 %v3705_v35, %v767_v36  ;;  %972 = vrot.lane.b32.xlu1 %v970_v34, %s3992_s2 }
 0x478   :  { %771 = vrot.lane.b32.xlu0 %v769_v37, %s3992_s2 }
 0x4e8   :  { %v973_v39 = vpop.permute.xlu1 %972 }
 0x4e9   :  { %v4177_v40 = vadd.f32 %v973_v39, %v965_v38 }
 0x4ea   :  { %v772_v42 = vpop.permute.xlu0 %771 }
 0x4eb   :  { %3706 = vtanh.f32 %v4177_v40  ;;  %v4180_v43 = vadd.f32 %v772_v42, %v764_v41 }
 0x4ed   :  { %3708 = vtanh.f32 %v4180_v43 }
 0x4f5   :  { %v3707_v4 = vpop.eup %3706 }
 0x4f6   :  { %978 = vrot.lane.b32.xlu1 %v3707_v4, %s3987_s0 }
 0x4f7   :  { %v3709_v57 = vpop.eup %3708 }
 0x4f8   :  { %777 = vrot.lane.b32.xlu0 %v3709_v57, %s3987_s0 }
 0x568   :  { %v979_v58 = vpop.permute.xlu1 %978 }
 0x569   :  { %v981_v63 = vmul.f32 %v3703_v31, %v979_v58 }
 0x56a   :  { %v778_v62 = vpop.permute.xlu0 %777 }
 0x56b   :  { %v982_v2 = vpack.c.bf16 %v981_v63, %v981_v63  ;;  %v780_v3 = vmul.f32 %v3705_v35, %v778_v62 }
 0x56d   :  { %v781_v5 = vpack.c.bf16 %v780_v3, %v780_v3  ;;  %1024 = vrot.lane.b32.xlu1 %v982_v2, %s3992_s2 }
 0x56f   :  { %835 = vrot.lane.b32.xlu0 %v781_v5, %s3992_s2 }
 0x5df   :  { %v4195_v6 = vpop.permute.xlu1 %1024 }
 0x5e0   :  { %3348 = vmatmul.mubr.msk.bf16.vlgmr.msra.gmra.mrb[20].mxu1 %vm576_vm2, %v4195_v6 }
 0x5e1   :  { %v836_v8 = vpop.permute.xlu0 %835  ;;  %3360 = vmatpush3.bf16.msra.mxu1 %v4183_v47  ;;  %3363 = vmatprep.mubr.msk.bf16.mxu1 %vm3990_vm1, %v3989_v0 }
 0x5e2   :  { %3324 = vmatmul.mubr.msk.bf16.vlgmr.msra.gmra.mrb[16].mxu0 %vm576_vm2, %v836_v8  ;;  %3361 = vmatprep.subr.bf16.mxu1 %v3989_v0 }
 0x5e3   :  { %3336 = vmatpush3.bf16.msra.mxu0 %v4115_v53  ;;  %3339 = vmatprep.mubr.msk.bf16.mxu0 %vm3990_vm1, %v3989_v0 }
 0x5e4   :  { %3337 = vmatprep.subr.bf16.mxu0 %v3989_v0 }
 0x5e5   :  { %3362 = vmatpush3.bf16.msra.mxu1 %v4186_v56 }
 0x5e6   :  { %3375 = vmatprep.subr.bf16.mxu1 %v3989_v0 }
 0x5e7   :  { %3338 = vmatpush3.bf16.msra.mxu0 %v4121_v54 }
 0x5e8   :  { %3351 = vmatprep.subr.bf16.mxu0 %v3989_v0 }
 0x5ea   :  { %3340 = vmatmul.mubr.msk.bf16.vlgmr.msra.gmra.mrb[20].mxu0 %vm576_vm2, %v836_v8 }
 0x5eb   :  { %3352 = vmatpush3.bf16.msra.mxu0 %v4127_v55  ;;  %3355 = vmatprep.mubr.msk.bf16.mxu0 %vm3990_vm1, %v3989_v0 }
 0x5ec   :  { %3353 = vmatprep.subr.bf16.mxu0 %v3989_v0 }
 0x5ef   :  { %3354 = vmatpush3.bf16.msra.mxu0 %v4132_v21 }
 0x5f0   :  { %3367 = vmatprep.subr.bf16.mxu0 %v3989_v0 }
 0x6b3   :  { %v1063_v9 = vpop.f32.mrb[20].mxu1 }
 0x6b4   :  { %v3349_v10 = vpop.f32.mrb[21].mxu1 }
 0x6b5   :  { %v886_v11 = vpop.f32.mrb[16].mxu0  ;;  %v1066_v12 = vpop.f32.mrb[22].mxu1 }
 0x6b6   :  { %v887_v13 = vadd.f32 %v886_v11, %v4168_v7  ;;  %v3325_v14 = vpop.f32.mrb[17].mxu0  ;;  %v3350_v15 = vpop.f32.mrb[23].mxu1 }
 0x6b7   :  { %v889_v16 = vpop.f32.mrb[18].mxu0 }
 0x6b8   :  { %v892_v17 = vadd.f32 %v887_v13, %v4087_v52  ;;  %v3326_v18 = vpop.f32.mrb[19].mxu0 }
 0x6ba   :  { %3710 = vtanh.f32 %v892_v17  ;;  %v3085_v7 = vmul.f32 -1.442695, %v892_v17 }
 0x6bd   :  { %v1017_v19 = vpop.f32.mrb[20].mxu0 }
 0x6be   :  { %v1064_v20 = vadd.f32 %v1063_v9, %v1017_v19  ;;  %v3341_v22 = vpop.f32.mrb[21].mxu0 }
 0x6bf   :  { %v1020_v23 = vpop.f32.mrb[22].mxu0 }
 0x6c0   :  { %v1069_v24 = vadd.f32 %v1064_v20, %v4085_v51  ;;  %v3342_v25 = vpop.f32.mrb[23].mxu0 }
 0x6c2   :  { %3712 = vtanh.f32 %v1069_v24  ;;  %v3090_v27 = vmul.f32 -1.442695, %v1069_v24 }
 0x6c3   :  { %3714 = vpow2.f32 %v3085_v7 }
 0x6c4   :  { %v3711_v26 = vpop.eup %3710  ;;  %3716 = vpow2.f32 %v3090_v27 }
 0x6c5   :  { %902 = vrot.lane.b32.xlu0 %v3711_v26, %s3987_s0 }
 0x6cc   :  { %v3713_v48 = vpop.eup %3712 }
 0x6cd   :  { %1079 = vrot.lane.b32.xlu1 %v3713_v48, %s3987_s0  ;;  %v3715_v29 = vpop.eup %3714 }
 0x6ce   :  { %v896_v30 = vadd.f32 1.0, %v3715_v29  ;;  %v3717_v31 = vpop.eup %3716 }
 0x6cf   :  { %v1073_v32 = vadd.f32 1.0, %v3717_v31 }
 0x6d0   :  { %3718 = vrcp.f32 %v896_v30 }
 0x6d1   :  { %3720 = vrcp.f32 %v1073_v32 }
 0x6da   :  { %v3719_v34 = vpop.eup %3718 }
 0x6db   :  { %v3721_v37 = vpop.eup %3720  ;;  %v900_v41 = vmul.f32 0.0, %v3719_v34 }
 0x6dc   :  { %v1077_v57 = vmul.f32 %v3721_v37, %v4180_v43 }
 0x737   :  { %v903_v35 = vpop.permute.xlu0 %902 }
 0x738   :  { %v905_v36 = vmul.f32 %v3719_v34, %v903_v35 }
 0x73a   :  { %907 = vrot.lane.b32.xlu0 %v905_v36, %s3992_s2 }
 0x73f   :  { %v1080_v38 = vpop.permute.xlu1 %1079 }
 0x740   :  { %v1082_v39 = vmul.f32 %v3721_v37, %v1080_v38 }
 0x742   :  { %1084 = vrot.lane.b32.xlu1 %v1082_v39, %s3992_s2 }
 0x7ac   :  { %v908_v42 = vpop.permute.xlu0 %907 }
 0x7ad   :  { %v4226_v4 = vadd.f32 %v908_v42, %v900_v41 }
 0x7af   :  { %3722 = vtanh.f32 %v4226_v4 }
 0x7b4   :  { %v1085_v58 = vpop.permute.xlu1 %1084 }
 0x7b5   :  { %v4230_v63 = vadd.f32 %v1085_v58, %v1077_v57 }
 0x7b7   :  { %3724 = vtanh.f32 %v4230_v63 }
 0x7b9   :  { %v3723_v62 = vpop.eup %3722 }
 0x7ba   :  { %913 = vrot.lane.b32.xlu0 %v3723_v62, %s3987_s0 }
 0x7c1   :  { %v3725_v2 = vpop.eup %3724 }
 0x7c2   :  { %1090 = vrot.lane.b32.xlu1 %v3725_v2, %s3987_s0 }
 0x82c   :  { %v914_v3 = vpop.permute.xlu0 %913 }
 0x82d   :  { %v916_v5 = vmul.f32 %v3719_v34, %v914_v3 }
 0x82f   :  { %v1095_v8 = vpack.c.bf16 %v916_v5, %v916_v5 }
 0x831   :  { %1097 = vrot.lane.b32.xlu0 %v1095_v8, %s3992_s2 }
 0x834   :  { %v1091_v9 = vpop.permute.xlu1 %1090 }
 0x835   :  { %v1093_v10 = vmul.f32 %v3721_v37, %v1091_v9 }
 0x837   :  { %v1094_v11 = vpack.c.bf16 %v1093_v10, %v1093_v10 }
 0x839   :  { %1143 = vrot.lane.b32.xlu1 %v1094_v11, %s3992_s2 }
 0x8a3   :  { %v1098_v43 = vpop.permute.xlu0 %1097 }
 0x8a4   :  { %3356 = vmatmul.mubr.msk.bf16.vlgmr.msra.gmra.mrb[24].mxu0 %vm576_vm2, %v1098_v43 }
 0x8a5   :  { %3368 = vmatpush3.bf16.msra.mxu0 %v4063_v44  ;;  %3371 = vmatprep.mubr.msk.bf16.mxu0 %vm3990_vm1, %v3989_v0 }
 0x8a6   :  { %3369 = vmatprep.subr.bf16.mxu0 %v3989_v0 }
 0x8a9   :  { %3370 = vmatpush3.bf16.msra.mxu0 %v4069_v45 }
 0x8aa   :  { %3383 = vmatprep.subr.bf16.mxu0 %v3989_v0 }
 0x8ab   :  { %v1144_v12 = vpop.permute.xlu1 %1143 }
 0x8ac   :  { %3364 = vmatmul.mubr.msk.bf16.vlgmr.msra.gmra.mrb[24].mxu1 %vm576_vm2, %v1144_v12  ;;  %3372 = vmatmul.mubr.msk.bf16.vlgmr.msra.gmra.mrb[28].mxu0 %vm576_vm2, %v4195_v6 }
 0x8ad   :  { %3376 = vmatpush3.bf16.msra.mxu1 %v4115_v53  ;;  %3379 = vmatprep.mubr.msk.bf16.mxu1 %vm3990_vm1, %v3989_v0 }
 0x8ae   :  { %3377 = vmatprep.subr.bf16.mxu1 %v3989_v0  ;;  %3384 = vmatpush3.bf16.msra.mxu0 %v4099_v28 }
 0x8af   :  { %3385 = vmatprep.subr.bf16.mxu0 %v3989_v0  ;;  %3387 = vmatprep.mubr.msk.bf16.mxu0 %vm3990_vm1, %v3989_v0 }
 0x8b1   :  { %3378 = vmatpush3.bf16.msra.mxu1 %v4121_v54 }
 0x8b2   :  { %3391 = vmatprep.subr.bf16.mxu1 %v3989_v0  ;;  %3386 = vmatpush3.bf16.msra.mxu0 %v4102_v33 }
 0x8b3   :  { %3399 = vmatprep.subr.bf16.mxu0 %v3989_v0 }
 0x8b4   :  { %3380 = vmatmul.mubr.msk.bf16.vlgmr.msra.gmra.mrb[28].mxu1 %vm576_vm2, %v1144_v12 }
 0x8b5   :  { %3392 = vmatpush3.bf16.msra.mxu1 %v4127_v55  ;;  %3395 = vmatprep.mubr.msk.bf16.mxu1 %vm3990_vm1, %v3989_v0 }
 0x8b6   :  { %3393 = vmatprep.subr.bf16.mxu1 %v3989_v0 }
 0x8b9   :  { %3394 = vmatpush3.bf16.msra.mxu1 %v4132_v21 }
 0x8ba   :  { %3407 = vmatprep.subr.bf16.mxu1 %v3989_v0 }
 0x977   :  { %v1136_v6 = vpop.f32.mrb[24].mxu0 }
 0x978   :  { %v3357_v13 = vpop.f32.mrb[25].mxu0 }
 0x979   :  { %v1139_v14 = vpop.f32.mrb[26].mxu0 }
 0x97a   :  { %v3358_v15 = vpop.f32.mrb[27].mxu0 }
 0x97f   :  { %v1182_v16 = vpop.f32.mrb[24].mxu1  ;;  %v1247_v17 = vpop.f32.mrb[28].mxu0 }
 0x980   :  { %v1183_v18 = vadd.f32 %v1182_v16, %v1136_v6  ;;  %v1253_v19 = vadd.f32 %v1247_v17, %v4148_v59  ;;  %v3365_v20 = vpop.f32.mrb[25].mxu1  ;;  %v3373_v22 = vpop.f32.mrb[29].mxu0 }
 0x981   :  { %v1185_v23 = vpop.f32.mrb[26].mxu1  ;;  %v1250_v24 = vpop.f32.mrb[30].mxu0 }
 0x982   :  { %v1188_v25 = vadd.f32 %v1183_v18, %v4087_v52  ;;  %3726 = vtanh.f32 %v1253_v19  ;;  %v3366_v26 = vpop.f32.mrb[27].mxu1  ;;  %v3374_v48 = vpop.f32.mrb[31].mxu0  ;;  %v3095_v59 = vmul.f32 -1.442695, %v1253_v19 }
 0x984   :  { %3728 = vtanh.f32 %v1188_v25  ;;  %v3093_v34 = vmul.f32 -1.442695, %v1188_v25 }
 0x985   :  { %3730 = vpow2.f32 %v3095_v59 }
 0x986   :  { %3732 = vpow2.f32 %v3093_v34 }
 0x987   :  { %v4268_v7 = vpop.f32.mrb[28].mxu1 }
 0x988   :  { %v3381_v27 = vpop.f32.mrb[29].mxu1 }
 0x989   :  { %v1316_v29 = vpop.f32.mrb[30].mxu1 }
 0x98a   :  { %v3382_v30 = vpop.f32.mrb[31].mxu1 }
 0x98c   :  { %v3727_v31 = vpop.eup %3726 }
 0x98d   :  { %1263 = vrot.lane.b32.xlu0 %v3727_v31, %s3987_s0 }
 0x98e   :  { %v3729_v32 = vpop.eup %3728 }
 0x98f   :  { %1198 = vrot.lane.b32.xlu1 %v3729_v32, %s3987_s0  ;;  %v3731_v35 = vpop.eup %3730 }
 0x990   :  { %v3733_v36 = vpop.eup %3732  ;;  %v1257_v37 = vadd.f32 1.0, %v3731_v35 }
 0x991   :  { %v1192_v38 = vadd.f32 1.0, %v3733_v36 }
 0x992   :  { %3734 = vrcp.f32 %v1257_v37 }
 0x993   :  { %3736 = vrcp.f32 %v1192_v38 }
 0x99c   :  { %v3735_v39 = vpop.eup %3734 }
 0x99d   :  { %v3737_v57 = vpop.eup %3736  ;;  %v1261_v2 = vmul.f32 %v3735_v39, %v4177_v40 }
 0x99e   :  { %v1196_v8 = vmul.f32 %v3737_v57, %v4226_v4 }
 0x9ff   :  { %v1264_v41 = vpop.permute.xlu0 %1263 }
 0xa00   :  { %v1266_v42 = vmul.f32 %v3735_v39, %v1264_v41 }
 0xa01   :  { %v1199_v58 = vpop.permute.xlu1 %1198 }
 0xa02   :  { %v1201_v62 = vmul.f32 %v3737_v57, %v1199_v58  ;;  %1268 = vrot.lane.b32.xlu0 %v1266_v42, %s3992_s2 }
 0xa04   :  { %1203 = vrot.lane.b32.xlu1 %v1201_v62, %s3992_s2 }
 0xa74   :  { %v1269_v3 = vpop.permute.xlu0 %1268 }
 0xa75   :  { %v4275_v5 = vadd.f32 %v1269_v3, %v1261_v2 }
 0xa76   :  { %v1204_v9 = vpop.permute.xlu1 %1203 }
 0xa77   :  { %3738 = vtanh.f32 %v4275_v5  ;;  %v4279_v10 = vadd.f32 %v1204_v9, %v1196_v8 }
 0xa79   :  { %3740 = vtanh.f32 %v4279_v10 }
 0xa81   :  { %v3739_v11 = vpop.eup %3738 }
 0xa82   :  { %1274 = vrot.lane.b32.xlu0 %v3739_v11, %s3987_s0 }
 0xa83   :  { %v3741_v43 = vpop.eup %3740 }
 0xa84   :  { %1209 = vrot.lane.b32.xlu1 %v3741_v43, %s3987_s0 }
 0xaf4   :  { %v1275_v12 = vpop.permute.xlu0 %1274 }
 0xaf5   :  { %v1277_v40 = vmul.f32 %v3735_v39, %v1275_v12 }
 0xaf6   :  { %v1210_v6 = vpop.permute.xlu1 %1209 }
 0xaf7   :  { %v1278_v13 = vpack.c.bf16 %v1277_v40, %v1277_v40  ;;  %v1212_v14 = vmul.f32 %v3737_v57, %v1210_v6 }
 0xaf9   :  { %v1391_v15 = vpack.c.bf16 %v1212_v14, %v1212_v14  ;;  %1320 = vrot.lane.b32.xlu0 %v1278_v13, %s3992_s2 }
 0xafb   :  { %1393 = vrot.lane.b32.xlu1 %v1391_v15, %s3992_s2 }
 0xb6b   :  { %v1321_v4 = vpop.permute.xlu0 %1320 }
 0xb6c   :  { %3388 = vmatmul.mubr.msk.bf16.vlgmr.msra.gmra.mrb[32].mxu0 %vm576_vm2, %v1321_v4 }
 0xb6d   :  { %v1394_v16 = vpop.permute.xlu1 %1393  ;;  %3400 = vmatpush3.bf16.msra.mxu0 %v4183_v47  ;;  %3403 = vmatprep.mubr.msk.bf16.mxu0 %vm3990_vm1, %v3989_v0 }
 0xb6e   :  { %3396 = vmatmul.mubr.msk.bf16.vlgmr.msra.gmra.mrb[32].mxu1 %vm576_vm2, %v1394_v16  ;;  %3401 = vmatprep.subr.bf16.mxu0 %v3989_v0 }
 0xb6f   :  { %3408 = vmatpush3.bf16.msra.mxu1 %v4063_v44  ;;  %3411 = vmatprep.mubr.msk.bf16.mxu1 %vm3990_vm1, %v3989_v0 }
 0xb70   :  { %3409 = vmatprep.subr.bf16.mxu1 %v3989_v0 }
 0xb71   :  { %3402 = vmatpush3.bf16.msra.mxu0 %v4186_v56 }
 0xb72   :  { %3415 = vmatprep.subr.bf16.mxu0 %v3989_v0 }
 0xb73   :  { %3410 = vmatpush3.bf16.msra.mxu1 %v4069_v45 }
 0xb74   :  { %3423 = vmatprep.subr.bf16.mxu1 %v3989_v0 }
 0xb76   :  { %3412 = vmatmul.mubr.msk.bf16.vlgmr.msra.gmra.mrb[36].mxu1 %vm576_vm2, %v1321_v4 }
 0xb77   :  { %3424 = vmatpush3.bf16.msra.mxu1 %v4099_v28  ;;  %3427 = vmatprep.mubr.msk.bf16.mxu1 %vm3990_vm1, %v3989_v0 }
 0xb78   :  { %3425 = vmatprep.subr.bf16.mxu1 %v3989_v0 }
 0xb7b   :  { %3426 = vmatpush3.bf16.msra.mxu1 %v4102_v33 }
 0xb7c   :  { %3439 = vmatprep.subr.bf16.mxu1 %v3989_v0 }
 0xc3f   :  { %v1359_v44 = vpop.f32.mrb[32].mxu0 }
 0xc40   :  { %v1360_v17 = vadd.f32 %v1359_v44, %v4268_v7  ;;  %v3389_v18 = vpop.f32.mrb[33].mxu0 }
 0xc41   :  { %v1362_v45 = vpop.f32.mrb[34].mxu0  ;;  %v4308_v19 = vpop.f32.mrb[32].mxu1 }
 0xc42   :  { %v1365_v20 = vadd.f32 %v1360_v17, %v4085_v51  ;;  %v3390_v22 = vpop.f32.mrb[35].mxu0  ;;  %v3397_v23 = vpop.f32.mrb[33].mxu1 }
 0xc43   :  { %v1435_v24 = vpop.f32.mrb[34].mxu1 }
 0xc44   :  { %3742 = vtanh.f32 %v1365_v20  ;;  %v3398_v25 = vpop.f32.mrb[35].mxu1  ;;  %v3098_v32 = vmul.f32 -1.442695, %v1365_v20 }
 0xc49   :  { %v1543_v26 = vpop.f32.mrb[36].mxu1 }
 0xc4a   :  { %v1549_v48 = vadd.f32 %v1543_v26, %v4150_v46  ;;  %v3413_v27 = vpop.f32.mrb[37].mxu1 }
 0xc4b   :  { %v1546_v29 = vpop.f32.mrb[38].mxu1 }
 0xc4c   :  { %3744 = vtanh.f32 %v1549_v48  ;;  %v3414_v30 = vpop.f32.mrb[39].mxu1  ;;  %v3103_v59 = vmul.f32 -1.442695, %v1549_v48 }
 0xc4d   :  { %3746 = vpow2.f32 %v3098_v32 }
 0xc4e   :  { %v3743_v31 = vpop.eup %3742  ;;  %3748 = vpow2.f32 %v3103_v59 }
 0xc4f   :  { %1375 = vrot.lane.b32.xlu0 %v3743_v31, %s3987_s0 }
 0xc56   :  { %v3745_v7 = vpop.eup %3744 }
 0xc57   :  { %1559 = vrot.lane.b32.xlu1 %v3745_v7, %s3987_s0  ;;  %v3747_v34 = vpop.eup %3746 }
 0xc58   :  { %v1369_v35 = vadd.f32 1.0, %v3747_v34  ;;  %v3749_v36 = vpop.eup %3748 }
 0xc59   :  { %v1553_v37 = vadd.f32 1.0, %v3749_v36 }
 0xc5a   :  { %3750 = vrcp.f32 %v1369_v35 }
 0xc5b   :  { %3752 = vrcp.f32 %v1553_v37 }
 0xc64   :  { %v3751_v46 = vpop.eup %3750 }
 0xc65   :  { %v3753_v41 = vpop.eup %3752  ;;  %v1373_v58 = vmul.f32 %v3751_v46, %v4230_v63 }
 0xc66   :  { %v1557_v3 = vmul.f32 %v3753_v41, %v4275_v5 }
 0xcc1   :  { %v1376_v38 = vpop.permute.xlu0 %1375 }
 0xcc2   :  { %v1378_v39 = vmul.f32 %v3751_v46, %v1376_v38 }
 0xcc4   :  { %1380 = vrot.lane.b32.xlu0 %v1378_v39, %s3992_s2 }
 0xcc9   :  { %v1560_v42 = vpop.permute.xlu1 %1559 }
 0xcca   :  { %v1562_v57 = vmul.f32 %v3753_v41, %v1560_v42 }
 0xccc   :  { %1564 = vrot.lane.b32.xlu1 %v1562_v57, %s3992_s2 }
 0xd36   :  { %v1381_v62 = vpop.permute.xlu0 %1380 }
 0xd37   :  { %v4317_v2 = vadd.f32 %v1381_v62, %v1373_v58 }
 0xd39   :  { %3754 = vtanh.f32 %v4317_v2 }
 0xd3e   :  { %v1565_v8 = vpop.permute.xlu1 %1564 }
 0xd3f   :  { %v4321_v9 = vadd.f32 %v1565_v8, %v1557_v3 }
 0xd41   :  { %3756 = vtanh.f32 %v4321_v9 }
 0xd43   :  { %v3755_v11 = vpop.eup %3754 }
 0xd44   :  { %1386 = vrot.lane.b32.xlu0 %v3755_v11, %s3987_s0 }
 0xd4b   :  { %v3757_v43 = vpop.eup %3756 }
 0xd4c   :  { %1570 = vrot.lane.b32.xlu1 %v3757_v43, %s3987_s0 }
 0xdb6   :  { %v1387_v12 = vpop.permute.xlu0 %1386 }
 0xdb7   :  { %v1389_v63 = vmul.f32 %v3751_v46, %v1387_v12 }
 0xdb9   :  { %v1390_v40 = vpack.c.bf16 %v1389_v63, %v1389_v63 }
 0xdbb   :  { %1439 = vrot.lane.b32.xlu0 %v1390_v40, %s3992_s2 }
 0xdbe   :  { %v1571_v6 = vpop.permute.xlu1 %1570 }
 0xdbf   :  { %v1573_v13 = vmul.f32 %v3753_v41, %v1571_v6 }
 0xdc1   :  { %v1574_v14 = vpack.c.bf16 %v1573_v13, %v1573_v13 }
 0xdc3   :  { %1616 = vrot.lane.b32.xlu1 %v1574_v14, %s3992_s2 }
 0xe2d   :  { %v1440_v5 = vpop.permute.xlu0 %1439 }
 0xe2e   :  { %3404 = vmatmul.mubr.msk.bf16.vlgmr.msra.gmra.mrb[36].mxu0 %vm576_vm2, %v1440_v5 }
 0xe2f   :  { %3416 = vmatpush3.bf16.msra.mxu0 %v4115_v53  ;;  %3419 = vmatprep.mubr.msk.bf16.mxu0 %vm3990_vm1, %v3989_v0 }
 0xe30   :  { %3417 = vmatprep.subr.bf16.mxu0 %v3989_v0 }
 0xe33   :  { %3418 = vmatpush3.bf16.msra.mxu0 %v4121_v54 }
 0xe34   :  { %3431 = vmatprep.subr.bf16.mxu0 %v3989_v0 }
 0xe35   :  { %v4335_v15 = vpop.permute.xlu1 %1616 }
 0xe36   :  { %3420 = vmatmul.mubr.msk.bf16.vlgmr.msra.gmra.mrb[40].mxu0 %vm576_vm2, %v1440_v5  ;;  %3428 = vmatmul.mubr.msk.bf16.vlgmr.msra.gmra.mrb[40].mxu1 %vm576_vm2, %v4335_v15  ;;  %v4372_v5 = vld [vmem:[#allocation7] sm:$0xff]  }
 0xe37   :  { %3432 = vmatpush3.bf16.msra.mxu0 %v4127_v55  ;;  %3435 = vmatprep.mubr.msk.bf16.mxu0 %vm3990_vm1, %v3989_v0 }
 0xe38   :  { %3433 = vmatprep.subr.bf16.mxu0 %v3989_v0  ;;  %3440 = vmatpush3.bf16.msra.mxu1 %v4183_v47 }
 0xe39   :  { %3441 = vmatprep.subr.bf16.mxu1 %v3989_v0  ;;  %3443 = vmatprep.mubr.msk.bf16.mxu1 %vm3990_vm1, %v3989_v0 }
 0xe3b   :  { %3434 = vmatpush3.bf16.msra.mxu0 %v4132_v21 }
 0xe3c   :  { %3447 = vmatprep.subr.bf16.mxu0 %v3989_v0  ;;  %3442 = vmatpush3.bf16.msra.mxu1 %v4186_v56 }
 0xe3d   :  { %3455 = vmatprep.subr.bf16.mxu1 %v3989_v0 }
 0xf01   :  { %v1478_v4 = vpop.f32.mrb[36].mxu0 }
 0xf02   :  { %v1479_v16 = vadd.f32 %v1478_v4, %v4308_v19  ;;  %v3405_v44 = vpop.f32.mrb[37].mxu0  ;;  %v4378_v4 = vld [vmem:[#allocation7 + $0x8] sm:$0xff]  }
 0xf03   :  { %v1481_v17 = vpop.f32.mrb[38].mxu0 }
 0xf04   :  { %v1484_v18 = vadd.f32 %v1479_v16, %v4087_v52  ;;  %v3406_v45 = vpop.f32.mrb[39].mxu0 }
 0xf06   :  { %3758 = vtanh.f32 %v1484_v18  ;;  %v3101_v7 = vmul.f32 -1.442695, %v1484_v18 }
 0xf09   :  { %v1609_v20 = vpop.f32.mrb[40].mxu0  ;;  %v1655_v22 = vpop.f32.mrb[40].mxu1 }
 0xf0a   :  { %v1656_v23 = vadd.f32 %v1655_v22, %v1609_v20  ;;  %v3421_v24 = vpop.f32.mrb[41].mxu0  ;;  %v3429_v25 = vpop.f32.mrb[41].mxu1 }
 0xf0b   :  { %v1612_v26 = vpop.f32.mrb[42].mxu0  ;;  %v1658_v48 = vpop.f32.mrb[42].mxu1 }
 0xf0c   :  { %v1661_v27 = vadd.f32 %v1656_v23, %v4085_v51  ;;  %v3422_v29 = vpop.f32.mrb[43].mxu0  ;;  %v3430_v30 = vpop.f32.mrb[43].mxu1 }
 0xf0e   :  { %3760 = vtanh.f32 %v1661_v27  ;;  %v3106_v32 = vmul.f32 -1.442695, %v1661_v27 }
 0xf0f   :  { %3762 = vpow2.f32 %v3101_v7 }
 0xf10   :  { %v3759_v31 = vpop.eup %3758  ;;  %3764 = vpow2.f32 %v3106_v32 }
 0xf11   :  { %1494 = vrot.lane.b32.xlu0 %v3759_v31, %s3987_s0 }
 0xf18   :  { %v3761_v19 = vpop.eup %3760 }
 0xf19   :  { %1671 = vrot.lane.b32.xlu1 %v3761_v19, %s3987_s0  ;;  %v3763_v59 = vpop.eup %3762 }
 0xf1a   :  { %v1488_v34 = vadd.f32 1.0, %v3763_v59  ;;  %v3765_v35 = vpop.eup %3764 }
 0xf1b   :  { %v1665_v36 = vadd.f32 1.0, %v3765_v35 }
 0xf1c   :  { %3766 = vrcp.f32 %v1488_v34 }
 0xf1d   :  { %3768 = vrcp.f32 %v1665_v36 }
 0xf26   :  { %v3767_v37 = vpop.eup %3766 }
 0xf27   :  { %v3769_v39 = vpop.eup %3768  ;;  %v1492_v57 = vmul.f32 %v3767_v37, %v4279_v10 }
 0xf28   :  { %v1669_v3 = vmul.f32 %v3769_v39, %v4317_v2 }
 0xf83   :  { %v1495_v46 = vpop.permute.xlu0 %1494 }
 0xf84   :  { %v1497_v38 = vmul.f32 %v3767_v37, %v1495_v46 }
 0xf86   :  { %1499 = vrot.lane.b32.xlu0 %v1497_v38, %s3992_s2 }
 0xf8b   :  { %v1672_v41 = vpop.permute.xlu1 %1671 }
 0xf8c   :  { %v1674_v42 = vmul.f32 %v3769_v39, %v1672_v41 }
 0xf8e   :  { %1676 = vrot.lane.b32.xlu1 %v1674_v42, %s3992_s2 }
 0xff8   :  { %v1500_v58 = vpop.permute.xlu0 %1499 }
 0xff9   :  { %v4360_v62 = vadd.f32 %v1500_v58, %v1492_v57 }
 0xffb   :  { %3770 = vtanh.f32 %v4360_v62 }
0x1000   :  { %v1677_v8 = vpop.permute.xlu1 %1676 }
0x1001   :  { %v4364_v11 = vadd.f32 %v1677_v8, %v1669_v3 }
0x1003   :  { %3772 = vtanh.f32 %v4364_v11 }
0x1005   :  { %v3771_v43 = vpop.eup %3770 }
0x1006   :  { %1505 = vrot.lane.b32.xlu0 %v3771_v43, %s3987_s0 }
0x100d   :  { %v3773_v12 = vpop.eup %3772 }
0x100e   :  { %1682 = vrot.lane.b32.xlu1 %v3773_v12, %s3987_s0 }
0x1078   :  { %v1506_v63 = vpop.permute.xlu0 %1505 }
0x1079   :  { %v1508_v10 = vmul.f32 %v3767_v37, %v1506_v63 }
0x107b   :  { %v1687_v40 = vpack.c.bf16 %v1508_v10, %v1508_v10 }
0x107d   :  { %1689 = vrot.lane.b32.xlu0 %v1687_v40, %s3992_s2 }
0x1080   :  { %v1683_v6 = vpop.permute.xlu1 %1682 }
0x1081   :  { %v1685_v13 = vmul.f32 %v3769_v39, %v1683_v6 }
0x1083   :  { %v1686_v14 = vpack.c.bf16 %v1685_v13, %v1685_v13 }
0x1085   :  { %1735 = vrot.lane.b32.xlu1 %v1686_v14, %s3992_s2  ;;  %v4445_v14 = vld [vmem:[#allocation7 + $0x18] sm:$0xff]  }
0x10ef   :  { %v1690_v2 = vpop.permute.xlu0 %1689 }
0x10f0   :  { %3436 = vmatmul.mubr.msk.bf16.vlgmr.msra.gmra.mrb[44].mxu0 %vm576_vm2, %v1690_v2 }
0x10f1   :  { %3448 = vmatpush3.bf16.msra.mxu0 %v4372_v5  ;;  %3451 = vmatprep.mubr.msk.bf16.mxu0 %vm3990_vm1, %v3989_v0 }
0x10f2   :  { %3449 = vmatprep.subr.bf16.mxu0 %v3989_v0 }
0x10f5   :  { %3450 = vmatpush3.bf16.msra.mxu0 %v4378_v4 }
0x10f6   :  { %3463 = vmatprep.subr.bf16.mxu0 %v3989_v0 }
0x10f7   :  { %v1736_v16 = vpop.permute.xlu1 %1735 }
0x10f8   :  { %3444 = vmatmul.mubr.msk.bf16.vlgmr.msra.gmra.mrb[44].mxu1 %vm576_vm2, %v1736_v16  ;;  %3452 = vmatmul.mubr.msk.bf16.vlgmr.msra.gmra.mrb[48].mxu0 %vm576_vm2, %v4335_v15 }
0x10f9   :  { %3456 = vmatpush3.bf16.msra.mxu1 %v4115_v53  ;;  %3459 = vmatprep.mubr.msk.bf16.mxu1 %vm3990_vm1, %v3989_v0 }
0x10fa   :  { %3457 = vmatprep.subr.bf16.mxu1 %v3989_v0  ;;  %3464 = vmatpush3.bf16.msra.mxu0 %v4099_v28 }
0x10fb   :  { %3465 = vmatprep.subr.bf16.mxu0 %v3989_v0  ;;  %3467 = vmatprep.mubr.msk.bf16.mxu0 %vm3990_vm1, %v3989_v0 }
0x10fd   :  { %3458 = vmatpush3.bf16.msra.mxu1 %v4121_v54 }
0x10fe   :  { %3471 = vmatprep.subr.bf16.mxu1 %v3989_v0  ;;  %3466 = vmatpush3.bf16.msra.mxu0 %v4102_v33 }
0x10ff   :  { %3479 = vmatprep.subr.bf16.mxu0 %v3989_v0 }
0x1100   :  { %3460 = vmatmul.mubr.msk.bf16.vlgmr.msra.gmra.mrb[48].mxu1 %vm576_vm2, %v1736_v16 }
0x1101   :  { %3472 = vmatpush3.bf16.msra.mxu1 %v4127_v55  ;;  %3475 = vmatprep.mubr.msk.bf16.mxu1 %vm3990_vm1, %v3989_v0 }
0x1102   :  { %3473 = vmatprep.subr.bf16.mxu1 %v3989_v0 }
0x1105   :  { %3474 = vmatpush3.bf16.msra.mxu1 %v4132_v21 }
0x1106   :  { %3487 = vmatprep.subr.bf16.mxu1 %v3989_v0 }
0x11c3   :  { %v1728_v28 = vpop.f32.mrb[44].mxu0 }
0x11c4   :  { %v3437_v53 = vpop.f32.mrb[45].mxu0 }
0x11c5   :  { %v1731_v54 = vpop.f32.mrb[46].mxu0 }
0x11c6   :  { %v3438_v15 = vpop.f32.mrb[47].mxu0 }
0x11cb   :  { %v1774_v33 = vpop.f32.mrb[44].mxu1  ;;  %v1839_v44 = vpop.f32.mrb[48].mxu0 }
0x11cc   :  { %v1775_v17 = vadd.f32 %v1774_v33, %v1728_v28  ;;  %v1845_v18 = vadd.f32 %v1839_v44, %v4081_v49  ;;  %v3445_v45 = vpop.f32.mrb[45].mxu1  ;;  %v3453_v55 = vpop.f32.mrb[49].mxu0 }
0x11cd   :  { %v1777_v20 = vpop.f32.mrb[46].mxu1  ;;  %v1842_v22 = vpop.f32.mrb[50].mxu0 }
0x11ce   :  { %v1780_v23 = vadd.f32 %v1775_v17, %v4087_v52  ;;  %3774 = vtanh.f32 %v1845_v18  ;;  %v3446_v24 = vpop.f32.mrb[47].mxu1  ;;  %v3454_v21 = vpop.f32.mrb[51].mxu0  ;;  %v3111_v49 = vmul.f32 -1.442695, %v1845_v18 }
0x11d0   :  { %3776 = vtanh.f32 %v1780_v23  ;;  %v3109_v31 = vmul.f32 -1.442695, %v1780_v23 }
0x11d1   :  { %3778 = vpow2.f32 %v3111_v49 }
0x11d2   :  { %3780 = vpow2.f32 %v3109_v31 }
0x11d3   :  { %v4406_v25 = vpop.f32.mrb[48].mxu1 }
0x11d4   :  { %v3461_v26 = vpop.f32.mrb[49].mxu1 }
0x11d5   :  { %v1908_v48 = vpop.f32.mrb[50].mxu1 }
0x11d6   :  { %v3462_v27 = vpop.f32.mrb[51].mxu1 }
0x11d8   :  { %v3775_v29 = vpop.eup %3774 }
0x11d9   :  { %1855 = vrot.lane.b32.xlu0 %v3775_v29, %s3987_s0 }
0x11da   :  { %v3777_v30 = vpop.eup %3776 }
0x11db   :  { %1790 = vrot.lane.b32.xlu1 %v3777_v30, %s3987_s0  ;;  %v3779_v19 = vpop.eup %3778 }
0x11dc   :  { %v3781_v7 = vpop.eup %3780  ;;  %v1849_v32 = vadd.f32 1.0, %v3779_v19 }
0x11dd   :  { %v1784_v59 = vadd.f32 1.0, %v3781_v7 }
0x11de   :  { %3782 = vrcp.f32 %v1849_v32 }
0x11df   :  { %3784 = vrcp.f32 %v1784_v59 }
0x11e8   :  { %v3783_v34 = vpop.eup %3782 }
0x11e9   :  { %v3785_v37 = vpop.eup %3784  ;;  %v1853_v39 = vmul.f32 %v3783_v34, %v4321_v9 }
0x11ea   :  { %v1788_v57 = vmul.f32 %v3785_v37, %v4360_v62 }
0x124b   :  { %v1856_v35 = vpop.permute.xlu0 %1855 }
0x124c   :  { %v1858_v36 = vmul.f32 %v3783_v34, %v1856_v35 }
0x124d   :  { %v1791_v46 = vpop.permute.xlu1 %1790 }
0x124e   :  { %v1793_v38 = vmul.f32 %v3785_v37, %v1791_v46  ;;  %1860 = vrot.lane.b32.xlu0 %v1858_v36, %s3992_s2 }
0x1250   :  { %1795 = vrot.lane.b32.xlu1 %v1793_v38, %s3992_s2 }
0x12c0   :  { %v1861_v41 = vpop.permute.xlu0 %1860 }
0x12c1   :  { %v4413_v42 = vadd.f32 %v1861_v41, %v1853_v39 }
0x12c2   :  { %v1796_v58 = vpop.permute.xlu1 %1795 }
0x12c3   :  { %3786 = vtanh.f32 %v4413_v42  ;;  %v4417_v3 = vadd.f32 %v1796_v58, %v1788_v57 }
0x12c5   :  { %3788 = vtanh.f32 %v4417_v3 }
0x12cd   :  { %v3787_v8 = vpop.eup %3786 }
0x12ce   :  { %1866 = vrot.lane.b32.xlu0 %v3787_v8, %s3987_s0 }
0x12cf   :  { %v3789_v43 = vpop.eup %3788 }
0x12d0   :  { %1801 = vrot.lane.b32.xlu1 %v3789_v43, %s3987_s0  ;;  %v4471_v43 = vld [vmem:[#allocation7 + $0x20] sm:$0xff]  }
0x1340   :  { %v1867_v12 = vpop.permute.xlu0 %1866 }
0x1341   :  { %v1869_v9 = vmul.f32 %v3783_v34, %v1867_v12  ;;  %v4477_v12 = vld [vmem:[#allocation7 + $0x28] sm:$0xff]  }
0x1342   :  { %v1802_v63 = vpop.permute.xlu1 %1801 }
0x1343   :  { %v1870_v10 = vpack.c.bf16 %v1869_v9, %v1869_v9  ;;  %v1804_v40 = vmul.f32 %v3785_v37, %v1802_v63  ;;  %v4486_v63 = vld [vmem:[#allocation7 + $0x40] sm:$0xff]  }
0x1345   :  { %v1983_v6 = vpack.c.bf16 %v1804_v40, %v1804_v40  ;;  %1912 = vrot.lane.b32.xlu0 %v1870_v10, %s3992_s2  ;;  %v4492_v10 = vld [vmem:[#allocation7 + $0x30] sm:$0xff]   ;;  %v4498_v40 = vld [vmem:[#allocation7 + $0x48] sm:$0xff]  }
0x1347   :  { %1985 = vrot.lane.b32.xlu1 %v1983_v6, %s3992_s2  ;;  %v4502_v6 = vld [vmem:[#allocation7 + $0x38] sm:$0xff]  }
0x13b7   :  { %v1913_v62 = vpop.permute.xlu0 %1912 }
0x13b8   :  { %3468 = vmatmul.mubr.msk.bf16.vlgmr.msra.gmra.mrb[52].mxu0 %vm576_vm2, %v1913_v62 }
0x13b9   :  { %v1986_v13 = vpop.permute.xlu1 %1985  ;;  %3480 = vmatpush3.bf16.msra.mxu0 %v4183_v47  ;;  %3483 = vmatprep.mubr.msk.bf16.mxu0 %vm3990_vm1, %v3989_v0  ;;  %v4439_v47 = vld [vmem:[#allocation7 + $0x10] sm:$0xff]  }
0x13ba   :  { %3476 = vmatmul.mubr.msk.bf16.vlgmr.msra.gmra.mrb[52].mxu1 %vm576_vm2, %v1986_v13  ;;  %3481 = vmatprep.subr.bf16.mxu0 %v3989_v0 }
0x13bb   :  { %3488 = vmatpush3.bf16.msra.mxu1 %v4372_v5  ;;  %3491 = vmatprep.mubr.msk.bf16.mxu1 %vm3990_vm1, %v3989_v0 }
0x13bc   :  { %3489 = vmatprep.subr.bf16.mxu1 %v3989_v0 }
0x13bd   :  { %3482 = vmatpush3.bf16.msra.mxu0 %v4186_v56 }
0x13be   :  { %3495 = vmatprep.subr.bf16.mxu0 %v3989_v0 }
0x13bf   :  { %3490 = vmatpush3.bf16.msra.mxu1 %v4378_v4 }
0x13c0   :  { %3503 = vmatprep.subr.bf16.mxu1 %v3989_v0 }
0x13c2   :  { %3492 = vmatmul.mubr.msk.bf16.vlgmr.msra.gmra.mrb[56].mxu1 %vm576_vm2, %v1913_v62 }
0x13c3   :  { %3504 = vmatpush3.bf16.msra.mxu1 %v4439_v47  ;;  %3507 = vmatprep.mubr.msk.bf16.mxu1 %vm3990_vm1, %v3989_v0 }
0x13c4   :  { %3505 = vmatprep.subr.bf16.mxu1 %v3989_v0 }
0x13c7   :  { %3506 = vmatpush3.bf16.msra.mxu1 %v4445_v14 }
0x13c8   :  { %3519 = vmatprep.subr.bf16.mxu1 %v3989_v0 }
0x148b   :  { %v1951_v56 = vpop.f32.mrb[52].mxu0 }
0x148c   :  { %v1952_v2 = vadd.f32 %v1951_v56, %v4406_v25  ;;  %v3469_v16 = vpop.f32.mrb[53].mxu0 }
0x148d   :  { %v1954_v28 = vpop.f32.mrb[54].mxu0  ;;  %v4450_v53 = vpop.f32.mrb[52].mxu1 }
0x148e   :  { %v1957_v54 = vadd.f32 %v1952_v2, %v4085_v51  ;;  %v3470_v15 = vpop.f32.mrb[55].mxu0  ;;  %v3477_v33 = vpop.f32.mrb[53].mxu1 }
0x148f   :  { %v2027_v44 = vpop.f32.mrb[54].mxu1 }
0x1490   :  { %3790 = vtanh.f32 %v1957_v54  ;;  %v3478_v17 = vpop.f32.mrb[55].mxu1  ;;  %v3114_v21 = vmul.f32 -1.442695, %v1957_v54 }
0x1495   :  { %v2135_v18 = vpop.f32.mrb[56].mxu1 }
0x1496   :  { %v2141_v45 = vadd.f32 %v2135_v18, %v4083_v50  ;;  %v3493_v55 = vpop.f32.mrb[57].mxu1 }
0x1497   :  { %v2138_v20 = vpop.f32.mrb[58].mxu1 }
0x1498   :  { %3792 = vtanh.f32 %v2141_v45  ;;  %v3494_v22 = vpop.f32.mrb[59].mxu1  ;;  %v3119_v25 = vmul.f32 -1.442695, %v2141_v45 }
0x1499   :  { %3794 = vpow2.f32 %v3114_v21 }
0x149a   :  { %v3791_v23 = vpop.eup %3790  ;;  %3796 = vpow2.f32 %v3119_v25 }
0x149b   :  { %1967 = vrot.lane.b32.xlu0 %v3791_v23, %s3987_s0 }
0x14a2   :  { %v3793_v24 = vpop.eup %3792 }
0x14a3   :  { %2151 = vrot.lane.b32.xlu1 %v3793_v24, %s3987_s0  ;;  %v3795_v26 = vpop.eup %3794 }
0x14a4   :  { %v1961_v48 = vadd.f32 1.0, %v3795_v26  ;;  %v3797_v27 = vpop.eup %3796 }
0x14a5   :  { %v2145_v29 = vadd.f32 1.0, %v3797_v27 }
0x14a6   :  { %3798 = vrcp.f32 %v1961_v48 }
0x14a7   :  { %3800 = vrcp.f32 %v2145_v29 }
0x14b0   :  { %v3799_v50 = vpop.eup %3798 }
0x14b1   :  { %v3801_v31 = vpop.eup %3800  ;;  %v1965_v32 = vmul.f32 %v3799_v50, %v4364_v11 }
0x14b2   :  { %v2149_v35 = vmul.f32 %v3801_v31, %v4413_v42 }
0x150d   :  { %v1968_v30 = vpop.permute.xlu0 %1967 }
0x150e   :  { %v1970_v49 = vmul.f32 %v3799_v50, %v1968_v30 }
0x1510   :  { %1972 = vrot.lane.b32.xlu0 %v1970_v49, %s3992_s2 }
0x1515   :  { %v2152_v19 = vpop.permute.xlu1 %2151 }
0x1516   :  { %v2154_v7 = vmul.f32 %v3801_v31, %v2152_v19 }
0x1518   :  { %2156 = vrot.lane.b32.xlu1 %v2154_v7, %s3992_s2 }
0x1582   :  { %v1973_v59 = vpop.permute.xlu0 %1972 }
0x1583   :  { %v4459_v34 = vadd.f32 %v1973_v59, %v1965_v32 }
0x1585   :  { %3802 = vtanh.f32 %v4459_v34 }
0x158a   :  { %v2157_v36 = vpop.permute.xlu1 %2156 }
0x158b   :  { %v4463_v37 = vadd.f32 %v2157_v36, %v2149_v35 }
0x158d   :  { %3804 = vtanh.f32 %v4463_v37 }
0x158f   :  { %v3803_v46 = vpop.eup %3802 }
0x1590   :  { %1978 = vrot.lane.b32.xlu0 %v3803_v46, %s3987_s0 }
0x1597   :  { %v3805_v38 = vpop.eup %3804 }
0x1598   :  { %2162 = vrot.lane.b32.xlu1 %v3805_v38, %s3987_s0 }
0x1602   :  { %v1979_v39 = vpop.permute.xlu0 %1978 }
0x1603   :  { %v1981_v11 = vmul.f32 %v3799_v50, %v1979_v39 }
0x1605   :  { %v1982_v41 = vpack.c.bf16 %v1981_v11, %v1981_v11 }
0x1607   :  { %2031 = vrot.lane.b32.xlu0 %v1982_v41, %s3992_s2 }
0x160a   :  { %v2163_v57 = vpop.permute.xlu1 %2162 }
0x160b   :  { %v2165_v58 = vmul.f32 %v3801_v31, %v2163_v57 }
0x160d   :  { %v2166_v8 = vpack.c.bf16 %v2165_v58, %v2165_v58 }
0x160f   :  { %2208 = vrot.lane.b32.xlu1 %v2166_v8, %s3992_s2 }
0x1679   :  { %v2032_v42 = vpop.permute.xlu0 %2031 }
0x167a   :  { %3484 = vmatmul.mubr.msk.bf16.vlgmr.msra.gmra.mrb[56].mxu0 %vm576_vm2, %v2032_v42 }
0x167b   :  { %3496 = vmatpush3.bf16.msra.mxu0 %v4471_v43  ;;  %3499 = vmatprep.mubr.msk.bf16.mxu0 %vm3990_vm1, %v3989_v0 }
0x167c   :  { %3497 = vmatprep.subr.bf16.mxu0 %v3989_v0 }
0x167f   :  { %3498 = vmatpush3.bf16.msra.mxu0 %v4477_v12 }
0x1680   :  { %3511 = vmatprep.subr.bf16.mxu0 %v3989_v0 }
0x1681   :  { %v4481_v9 = vpop.permute.xlu1 %2208 }
0x1682   :  { %3500 = vmatmul.mubr.msk.bf16.vlgmr.msra.gmra.mrb[60].mxu0 %vm576_vm2, %v2032_v42  ;;  %3508 = vmatmul.mubr.msk.bf16.vlgmr.msra.gmra.mrb[60].mxu1 %vm576_vm2, %v4481_v9 }
0x1683   :  { %3512 = vmatpush3.bf16.msra.mxu0 %v4486_v63  ;;  %3515 = vmatprep.mubr.msk.bf16.mxu0 %vm3990_vm1, %v3989_v0 }
0x1684   :  { %3513 = vmatprep.subr.bf16.mxu0 %v3989_v0  ;;  %3520 = vmatpush3.bf16.msra.mxu1 %v4492_v10 }
0x1685   :  { %3521 = vmatprep.subr.bf16.mxu1 %v3989_v0  ;;  %3523 = vmatprep.mubr.msk.bf16.mxu1 %vm3990_vm1, %v3989_v0 }
0x1687   :  { %3514 = vmatpush3.bf16.msra.mxu0 %v4498_v40 }
0x1688   :  { %3527 = vmatprep.subr.bf16.mxu0 %v3989_v0  ;;  %3522 = vmatpush3.bf16.msra.mxu1 %v4502_v6 }
0x1689   :  { %3535 = vmatprep.subr.bf16.mxu1 %v3989_v0 }
0x174d   :  { %v2070_v62 = vpop.f32.mrb[56].mxu0 }
0x174e   :  { %v2071_v13 = vadd.f32 %v2070_v62, %v4450_v53  ;;  %v3485_v56 = vpop.f32.mrb[57].mxu0 }
0x174f   :  { %v2073_v2 = vpop.f32.mrb[58].mxu0 }
0x1750   :  { %v2076_v16 = vadd.f32 %v2071_v13, %v4087_v52  ;;  %v3486_v28 = vpop.f32.mrb[59].mxu0 }
0x1752   :  { %3806 = vtanh.f32 %v2076_v16  ;;  %v3117_v24 = vmul.f32 -1.442695, %v2076_v16 }
0x1755   :  { %v2201_v54 = vpop.f32.mrb[60].mxu0  ;;  %v2247_v15 = vpop.f32.mrb[60].mxu1 }
0x1756   :  { %v2248_v33 = vadd.f32 %v2247_v15, %v2201_v54  ;;  %v3501_v44 = vpop.f32.mrb[61].mxu0  ;;  %v3509_v17 = vpop.f32.mrb[61].mxu1 }
0x1757   :  { %v2204_v18 = vpop.f32.mrb[62].mxu0  ;;  %v2250_v45 = vpop.f32.mrb[62].mxu1 }
0x1758   :  { %v2253_v55 = vadd.f32 %v2248_v33, %v4085_v51  ;;  %v3502_v20 = vpop.f32.mrb[63].mxu0  ;;  %v3510_v22 = vpop.f32.mrb[63].mxu1 }
0x175a   :  { %3808 = vtanh.f32 %v2253_v55  ;;  %v3122_v21 = vmul.f32 -1.442695, %v2253_v55 }
0x175b   :  { %3810 = vpow2.f32 %v3117_v24 }
0x175c   :  { %v3807_v23 = vpop.eup %3806  ;;  %3812 = vpow2.f32 %v3122_v21 }
0x175d   :  { %2086 = vrot.lane.b32.xlu0 %v3807_v23, %s3987_s0 }
0x1764   :  { %v3809_v53 = vpop.eup %3808 }
0x1765   :  { %2263 = vrot.lane.b32.xlu1 %v3809_v53, %s3987_s0  ;;  %v3811_v25 = vpop.eup %3810 }
0x1766   :  { %v2080_v26 = vadd.f32 1.0, %v3811_v25  ;;  %v3813_v48 = vpop.eup %3812 }
0x1767   :  { %v2257_v27 = vadd.f32 1.0, %v3813_v48 }
0x1768   :  { %3814 = vrcp.f32 %v2080_v26 }
0x1769   :  { %3816 = vrcp.f32 %v2257_v27 }
0x1772   :  { %v3815_v29 = vpop.eup %3814 }
0x1773   :  { %v3817_v49 = vpop.eup %3816  ;;  %v2084_v7 = vmul.f32 %v3815_v29, %v4417_v3 }
0x1774   :  { %v2261_v35 = vmul.f32 %v3817_v49, %v4459_v34 }
0x17cf   :  { %v2087_v50 = vpop.permute.xlu0 %2086 }
0x17d0   :  { %v2089_v30 = vmul.f32 %v3815_v29, %v2087_v50 }
0x17d2   :  { %2091 = vrot.lane.b32.xlu0 %v2089_v30, %s3992_s2 }
0x17d7   :  { %v2264_v31 = vpop.permute.xlu1 %2263 }
0x17d8   :  { %v2266_v19 = vmul.f32 %v3817_v49, %v2264_v31 }
0x17da   :  { %2268 = vrot.lane.b32.xlu1 %v2266_v19, %s3992_s2 }
0x1844   :  { %v2092_v32 = vpop.permute.xlu0 %2091 }
0x1845   :  { %v4514_v59 = vadd.f32 %v2092_v32, %v2084_v7 }
0x1847   :  { %3818 = vtanh.f32 %v4514_v59 }
0x184c   :  { %v2269_v36 = vpop.permute.xlu1 %2268 }
0x184d   :  { %v4518_v46 = vadd.f32 %v2269_v36, %v2261_v35 }
0x184f   :  { %3820 = vtanh.f32 %v4518_v46 }
0x1851   :  { %v3819_v38 = vpop.eup %3818 }
0x1852   :  { %2097 = vrot.lane.b32.xlu0 %v3819_v38, %s3987_s0 }
0x1859   :  { %v3821_v39 = vpop.eup %3820 }
0x185a   :  { %2274 = vrot.lane.b32.xlu1 %v3821_v39, %s3987_s0 }
0x18c4   :  { %v2098_v11 = vpop.permute.xlu0 %2097 }
0x18c5   :  { %v2100_v3 = vmul.f32 %v3815_v29, %v2098_v11 }
0x18c7   :  { %v2279_v41 = vpack.c.bf16 %v2100_v3, %v2100_v3 }
0x18c9   :  { %2281 = vrot.lane.b32.xlu0 %v2279_v41, %s3992_s2 }
0x18cc   :  { %v2275_v57 = vpop.permute.xlu1 %2274 }
0x18cd   :  { %v2277_v58 = vmul.f32 %v3817_v49, %v2275_v57 }
0x18cf   :  { %v2278_v8 = vpack.c.bf16 %v2277_v58, %v2277_v58 }
0x18d1   :  { %2327 = vrot.lane.b32.xlu1 %v2278_v8, %s3992_s2 }
0x193b   :  { %v2282_v34 = vpop.permute.xlu0 %2281 }
0x193c   :  { %3516 = vmatmul.mubr.msk.bf16.vlgmr.msra.gmra.mrb[64].mxu0 %vm576_vm2, %v2282_v34 }
0x193d   :  { %3528 = vmatpush3.bf16.msra.mxu0 %v4372_v5  ;;  %3531 = vmatprep.mubr.msk.bf16.mxu0 %vm3990_vm1, %v3989_v0 }
0x193e   :  { %3529 = vmatprep.subr.bf16.mxu0 %v3989_v0 }
0x1941   :  { %3530 = vmatpush3.bf16.msra.mxu0 %v4378_v4 }
0x1942   :  { %3543 = vmatprep.subr.bf16.mxu0 %v3989_v0 }
0x1943   :  { %v2328_v42 = vpop.permute.xlu1 %2327 }
0x1944   :  { %3524 = vmatmul.mubr.msk.bf16.vlgmr.msra.gmra.mrb[64].mxu1 %vm576_vm2, %v2328_v42  ;;  %3532 = vmatmul.mubr.msk.bf16.vlgmr.msra.gmra.mrb[68].mxu0 %vm576_vm2, %v4481_v9 }
0x1945   :  { %3536 = vmatpush3.bf16.msra.mxu1 %v4471_v43  ;;  %3539 = vmatprep.mubr.msk.bf16.mxu1 %vm3990_vm1, %v3989_v0 }
0x1946   :  { %3537 = vmatprep.subr.bf16.mxu1 %v3989_v0  ;;  %3544 = vmatpush3.bf16.msra.mxu0 %v4439_v47 }
0x1947   :  { %3545 = vmatprep.subr.bf16.mxu0 %v3989_v0  ;;  %3547 = vmatprep.mubr.msk.bf16.mxu0 %vm3990_vm1, %v3989_v0 }
0x1949   :  { %3538 = vmatpush3.bf16.msra.mxu1 %v4477_v12 }
0x194a   :  { %3551 = vmatprep.subr.bf16.mxu1 %v3989_v0  ;;  %3546 = vmatpush3.bf16.msra.mxu0 %v4445_v14 }
0x194b   :  { %3559 = vmatprep.subr.bf16.mxu0 %v3989_v0 }
0x194c   :  { %3540 = vmatmul.mubr.msk.bf16.vlgmr.msra.gmra.mrb[68].mxu1 %vm576_vm2, %v2328_v42 }
0x194d   :  { %3552 = vmatpush3.bf16.msra.mxu1 %v4486_v63  ;;  %3555 = vmatprep.mubr.msk.bf16.mxu1 %vm3990_vm1, %v3989_v0 }
0x194e   :  { %3553 = vmatprep.subr.bf16.mxu1 %v3989_v0 }
0x1951   :  { %3554 = vmatpush3.bf16.msra.mxu1 %v4498_v40 }
0x1952   :  { %3567 = vmatprep.subr.bf16.mxu1 %v3989_v0 }
0x1a0f   :  { %v2320_v9 = vpop.f32.mrb[64].mxu0 }
0x1a10   :  { %v3517_v62 = vpop.f32.mrb[65].mxu0 }
0x1a11   :  { %v2323_v13 = vpop.f32.mrb[66].mxu0 }
0x1a12   :  { %v3518_v56 = vpop.f32.mrb[67].mxu0 }
0x1a17   :  { %v2366_v2 = vpop.f32.mrb[64].mxu1  ;;  %v2431_v16 = vpop.f32.mrb[68].mxu0 }
0x1a18   :  { %v2367_v28 = vadd.f32 %v2366_v2, %v2320_v9  ;;  %v2437_v54 = vadd.f32 %v2431_v16, %v4152_v60  ;;  %v3525_v15 = vpop.f32.mrb[65].mxu1  ;;  %v3533_v33 = vpop.f32.mrb[69].mxu0 }
0x1a19   :  { %v2369_v44 = vpop.f32.mrb[66].mxu1  ;;  %v2434_v17 = vpop.f32.mrb[70].mxu0 }
0x1a1a   :  { %v2372_v18 = vadd.f32 %v2367_v28, %v4087_v52  ;;  %3822 = vtanh.f32 %v2437_v54  ;;  %v3526_v45 = vpop.f32.mrb[67].mxu1  ;;  %v3534_v55 = vpop.f32.mrb[71].mxu0  ;;  %v3127_v60 = vmul.f32 -1.442695, %v2437_v54 }
0x1a1c   :  { %3824 = vtanh.f32 %v2372_v18  ;;  %v3125_v25 = vmul.f32 -1.442695, %v2372_v18 }
0x1a1d   :  { %3826 = vpow2.f32 %v3127_v60 }
0x1a1e   :  { %3828 = vpow2.f32 %v3125_v25 }
0x1a1f   :  { %v4556_v20 = vpop.f32.mrb[68].mxu1 }
0x1a20   :  { %v3541_v22 = vpop.f32.mrb[69].mxu1 }
0x1a21   :  { %v2500_v23 = vpop.f32.mrb[70].mxu1 }
0x1a22   :  { %v3542_v53 = vpop.f32.mrb[71].mxu1 }
0x1a24   :  { %v3823_v24 = vpop.eup %3822 }
0x1a25   :  { %2447 = vrot.lane.b32.xlu0 %v3823_v24, %s3987_s0 }
0x1a26   :  { %v3825_v21 = vpop.eup %3824 }
0x1a27   :  { %2382 = vrot.lane.b32.xlu1 %v3825_v21, %s3987_s0  ;;  %v3827_v26 = vpop.eup %3826 }
0x1a28   :  { %v3829_v48 = vpop.eup %3828  ;;  %v2441_v27 = vadd.f32 1.0, %v3827_v26 }
0x1a29   :  { %v2376_v29 = vadd.f32 1.0, %v3829_v48 }
0x1a2a   :  { %3830 = vrcp.f32 %v2441_v27 }
0x1a2b   :  { %3832 = vrcp.f32 %v2376_v29 }
0x1a34   :  { %v3831_v50 = vpop.eup %3830 }
0x1a35   :  { %v3833_v31 = vpop.eup %3832  ;;  %v2445_v32 = vmul.f32 %v3831_v50, %v4463_v37 }
0x1a36   :  { %v2380_v38 = vmul.f32 %v3833_v31, %v4514_v59 }
0x1a97   :  { %v2448_v30 = vpop.permute.xlu0 %2447 }
0x1a98   :  { %v2450_v49 = vmul.f32 %v3831_v50, %v2448_v30 }
0x1a99   :  { %v2383_v19 = vpop.permute.xlu1 %2382 }
0x1a9a   :  { %v2385_v7 = vmul.f32 %v3833_v31, %v2383_v19  ;;  %2452 = vrot.lane.b32.xlu0 %v2450_v49, %s3992_s2 }
0x1a9c   :  { %2387 = vrot.lane.b32.xlu1 %v2385_v7, %s3992_s2 }
0x1b0c   :  { %v2453_v35 = vpop.permute.xlu0 %2452 }
0x1b0d   :  { %v4563_v36 = vadd.f32 %v2453_v35, %v2445_v32 }
0x1b0e   :  { %v2388_v39 = vpop.permute.xlu1 %2387 }
0x1b0f   :  { %3834 = vtanh.f32 %v4563_v36  ;;  %v4567_v11 = vadd.f32 %v2388_v39, %v2380_v38 }
0x1b11   :  { %3836 = vtanh.f32 %v4567_v11 }
0x1b19   :  { %v3835_v3 = vpop.eup %3834 }
0x1b1a   :  { %2458 = vrot.lane.b32.xlu0 %v3835_v3, %s3987_s0 }
0x1b1b   :  { %v3837_v41 = vpop.eup %3836 }
0x1b1c   :  { %2393 = vrot.lane.b32.xlu1 %v3837_v41, %s3987_s0 }
0x1b8c   :  { %v2459_v57 = vpop.permute.xlu0 %2458 }
0x1b8d   :  { %v2461_v37 = vmul.f32 %v3831_v50, %v2459_v57 }
0x1b8e   :  { %v2394_v58 = vpop.permute.xlu1 %2393 }
0x1b8f   :  { %v2462_v8 = vpack.c.bf16 %v2461_v37, %v2461_v37  ;;  %v2396_v34 = vmul.f32 %v3833_v31, %v2394_v58 }
0x1b91   :  { %v2575_v42 = vpack.c.bf16 %v2396_v34, %v2396_v34  ;;  %2504 = vrot.lane.b32.xlu0 %v2462_v8, %s3992_s2 }
0x1b93   :  { %2577 = vrot.lane.b32.xlu1 %v2575_v42, %s3992_s2 }
0x1c03   :  { %v2505_v59 = vpop.permute.xlu0 %2504 }
0x1c04   :  { %3548 = vmatmul.mubr.msk.bf16.vlgmr.msra.gmra.mrb[72].mxu0 %vm576_vm2, %v2505_v59 }
0x1c05   :  { %v2578_v9 = vpop.permute.xlu1 %2577  ;;  %3560 = vmatpush3.bf16.msra.mxu0 %v4492_v10  ;;  %3563 = vmatprep.mubr.msk.bf16.mxu0 %vm3990_vm1, %v3989_v0 }
0x1c06   :  { %3556 = vmatmul.mubr.msk.bf16.vlgmr.msra.gmra.mrb[72].mxu1 %vm576_vm2, %v2578_v9  ;;  %3561 = vmatprep.subr.bf16.mxu0 %v3989_v0 }
0x1c07   :  { %3568 = vmatpush3.bf16.msra.mxu1 %v4372_v5  ;;  %3571 = vmatprep.mubr.msk.bf16.mxu1 %vm3990_vm1, %v3989_v0 }
0x1c08   :  { %3569 = vmatprep.subr.bf16.mxu1 %v3989_v0 }
0x1c09   :  { %3562 = vmatpush3.bf16.msra.mxu0 %v4502_v6 }
0x1c0a   :  { %3575 = vmatprep.subr.bf16.mxu0 %v3989_v0 }
0x1c0b   :  { %3570 = vmatpush3.bf16.msra.mxu1 %v4378_v4 }
0x1c0c   :  { %3583 = vmatprep.subr.bf16.mxu1 %v3989_v0 }
0x1c0e   :  { %3572 = vmatmul.mubr.msk.bf16.vlgmr.msra.gmra.mrb[76].mxu1 %vm576_vm2, %v2505_v59 }
0x1c0f   :  { %3584 = vmatpush3.bf16.msra.mxu1 %v4439_v47  ;;  %3587 = vmatprep.mubr.msk.bf16.mxu1 %vm3990_vm1, %v3989_v0 }
0x1c10   :  { %3585 = vmatprep.subr.bf16.mxu1 %v3989_v0 }
0x1c13   :  { %3586 = vmatpush3.bf16.msra.mxu1 %v4445_v14 }
0x1c14   :  { %3599 = vmatprep.subr.bf16.mxu1 %v3989_v0 }
0x1cd7   :  { %v2543_v5 = vpop.f32.mrb[72].mxu0 }
0x1cd8   :  { %v2544_v62 = vadd.f32 %v2543_v5, %v4556_v20  ;;  %v3549_v13 = vpop.f32.mrb[73].mxu0 }
0x1cd9   :  { %v2546_v4 = vpop.f32.mrb[74].mxu0  ;;  %v4596_v56 = vpop.f32.mrb[72].mxu1 }
0x1cda   :  { %v2549_v2 = vadd.f32 %v2544_v62, %v4085_v51  ;;  %v3550_v16 = vpop.f32.mrb[75].mxu0  ;;  %v3557_v47 = vpop.f32.mrb[73].mxu1 }
0x1cdb   :  { %v2619_v28 = vpop.f32.mrb[74].mxu1 }
0x1cdc   :  { %3838 = vtanh.f32 %v2549_v2  ;;  %v3558_v54 = vpop.f32.mrb[75].mxu1  ;;  %v3130_v55 = vmul.f32 -1.442695, %v2549_v2 }
0x1ce1   :  { %v2727_v15 = vpop.f32.mrb[76].mxu1 }
0x1ce2   :  { %v2733_v33 = vadd.f32 %v2727_v15, %v4154_v61  ;;  %v3573_v14 = vpop.f32.mrb[77].mxu1 }
0x1ce3   :  { %v2730_v44 = vpop.f32.mrb[78].mxu1 }
0x1ce4   :  { %3840 = vtanh.f32 %v2733_v33  ;;  %v3574_v17 = vpop.f32.mrb[79].mxu1  ;;  %v3135_v20 = vmul.f32 -1.442695, %v2733_v33 }
0x1ce5   :  { %3842 = vpow2.f32 %v3130_v55 }
0x1ce6   :  { %v3839_v18 = vpop.eup %3838  ;;  %3844 = vpow2.f32 %v3135_v20 }
0x1ce7   :  { %2559 = vrot.lane.b32.xlu0 %v3839_v18, %s3987_s0 }
0x1cee   :  { %v3841_v45 = vpop.eup %3840 }
0x1cef   :  { %2743 = vrot.lane.b32.xlu1 %v3841_v45, %s3987_s0  ;;  %v3843_v22 = vpop.eup %3842 }
0x1cf0   :  { %v2553_v23 = vadd.f32 1.0, %v3843_v22  ;;  %v3845_v53 = vpop.eup %3844 }
0x1cf1   :  { %v2737_v24 = vadd.f32 1.0, %v3845_v53 }
0x1cf2   :  { %3846 = vrcp.f32 %v2553_v23 }
0x1cf3   :  { %3848 = vrcp.f32 %v2737_v24 }
0x1cfc   :  { %v3847_v61 = vpop.eup %3846 }
0x1cfd   :  { %v3849_v25 = vpop.eup %3848  ;;  %v2557_v27 = vmul.f32 %v3847_v61, %v4518_v46 }
0x1cfe   :  { %v2741_v30 = vmul.f32 %v3849_v25, %v4563_v36 }
0x1d59   :  { %v2560_v21 = vpop.permute.xlu0 %2559 }
0x1d5a   :  { %v2562_v60 = vmul.f32 %v3847_v61, %v2560_v21 }
0x1d5c   :  { %2564 = vrot.lane.b32.xlu0 %v2562_v60, %s3992_s2 }
0x1d61   :  { %v2744_v26 = vpop.permute.xlu1 %2743 }
0x1d62   :  { %v2746_v48 = vmul.f32 %v3849_v25, %v2744_v26 }
0x1d64   :  { %2748 = vrot.lane.b32.xlu1 %v2746_v48, %s3992_s2 }
0x1dce   :  { %v2565_v29 = vpop.permute.xlu0 %2564 }
0x1dcf   :  { %v4605_v50 = vadd.f32 %v2565_v29, %v2557_v27 }
0x1dd1   :  { %3850 = vtanh.f32 %v4605_v50 }
0x1dd6   :  { %v2749_v49 = vpop.permute.xlu1 %2748 }
0x1dd7   :  { %v2751_v31 = vadd.f32 %v2749_v49, %v2741_v30 }
0x1dd9   :  { %3852 = vtanh.f32 %v2751_v31 }
0x1ddb   :  { %v3851_v19 = vpop.eup %3850 }
0x1ddc   :  { %2570 = vrot.lane.b32.xlu0 %v3851_v19, %s3987_s0 }
0x1de3   :  { %v3853_v7 = vpop.eup %3852 }
0x1de4   :  { %2754 = vrot.lane.b32.xlu1 %v3853_v7, %s3987_s0 }
0x1e4e   :  { %v2571_v32 = vpop.permute.xlu0 %2570 }
0x1e4f   :  { %v2573_v35 = vmul.f32 %v3847_v61, %v2571_v32 }
0x1e51   :  { %v2574_v38 = vpack.c.bf16 %v2573_v35, %v2573_v35 }
0x1e53   :  { %2623 = vrot.lane.b32.xlu0 %v2574_v38, %s3992_s2 }
0x1e56   :  { %v2755_v46 = vpop.permute.xlu1 %2754 }
0x1e57   :  { %v2757_v39 = vmul.f32 %v3849_v25, %v2755_v46 }
0x1e59   :  { %v2758_v3 = vpack.c.bf16 %v2757_v39, %v2757_v39 }
0x1e5b   :  { %2800 = vrot.lane.b32.xlu1 %v2758_v3, %s3992_s2 }
0x1ec5   :  { %v2624_v36 = vpop.permute.xlu0 %2623 }
0x1ec6   :  { %3564 = vmatmul.mubr.msk.bf16.vlgmr.msra.gmra.mrb[76].mxu0 %vm576_vm2, %v2624_v36 }
0x1ec7   :  { %3576 = vmatpush3.bf16.msra.mxu0 %v4471_v43  ;;  %3579 = vmatprep.mubr.msk.bf16.mxu0 %vm3990_vm1, %v3989_v0 }
0x1ec8   :  { %3577 = vmatprep.subr.bf16.mxu0 %v3989_v0 }
0x1ecb   :  { %3578 = vmatpush3.bf16.msra.mxu0 %v4477_v12 }
0x1ecc   :  { %3591 = vmatprep.subr.bf16.mxu0 %v3989_v0 }
0x1ecd   :  { %v2801_v41 = vpop.permute.xlu1 %2800 }
0x1ece   :  { %3580 = vmatmul.mubr.msk.bf16.vlgmr.msra.gmra.mrb[80].mxu0 %vm576_vm2, %v2624_v36  ;;  %3588 = vmatmul.mubr.msk.bf16.vlgmr.msra.gmra.mrb[80].mxu1 %vm576_vm2, %v2801_v41 }
0x1ecf   :  { %3592 = vmatpush3.bf16.msra.mxu0 %v4486_v63  ;;  %3595 = vmatprep.mubr.msk.bf16.mxu0 %vm3990_vm1, %v3989_v0 }
0x1ed0   :  { %3593 = vmatprep.subr.bf16.mxu0 %v3989_v0  ;;  %3600 = vmatpush3.bf16.msra.mxu1 %v4492_v10 }
0x1ed1   :  { %3601 = vmatprep.subr.bf16.mxu1 %v3989_v0  ;;  %3603 = vmatprep.mubr.msk.bf16.mxu1 %vm3990_vm1, %v3989_v0 }
0x1ed3   :  { %3594 = vmatpush3.bf16.msra.mxu0 %v4498_v40 }
0x1ed4   :  { %3602 = vmatpush3.bf16.msra.mxu1 %v4502_v6  ;;  %3607 = vmatprep.subr.bf16.mxu0 %v3989_v0 }
0x1f99   :  { %v2662_v43 = vpop.f32.mrb[76].mxu0 }
0x1f9a   :  { %v2663_v12 = vadd.f32 %v2662_v43, %v4596_v56  ;;  %v3565_v63 = vpop.f32.mrb[77].mxu0 }
0x1f9b   :  { %v2665_v57 = vpop.f32.mrb[78].mxu0 }
0x1f9c   :  { %v2668_v37 = vadd.f32 %v2663_v12, %v4087_v52  ;;  %v3566_v58 = vpop.f32.mrb[79].mxu0 }
0x1f9d   :  { %v3685_v58 = vld [vmem:[#allocation7 + $0x58] sm:$0xff]  }
0x1f9e   :  { %3854 = vtanh.f32 %v2668_v37  ;;  %v3133_v56 = vmul.f32 -1.442695, %v2668_v37 }
0x1fa1   :  { %v2793_v10 = vpop.f32.mrb[80].mxu0  ;;  %v2839_v8 = vpop.f32.mrb[80].mxu1 }
0x1fa2   :  { %v2840_v34 = vadd.f32 %v2839_v8, %v2793_v10  ;;  %v3581_v42 = vpop.f32.mrb[81].mxu0  ;;  %v3589_v59 = vpop.f32.mrb[81].mxu1 }
0x1fa3   :  { %v2796_v9 = vpop.f32.mrb[82].mxu0  ;;  %v2842_v40 = vpop.f32.mrb[82].mxu1 }
0x1fa4   :  { %v2845_v6 = vadd.f32 %v2840_v34, %v4085_v51  ;;  %v3582_v5 = vpop.f32.mrb[83].mxu0  ;;  %v3590_v62 = vpop.f32.mrb[83].mxu1 }
0x1fa6   :  { %3856 = vtanh.f32 %v2845_v6  ;;  %v3138_v2 = vmul.f32 -1.442695, %v2845_v6 }
0x1fa7   :  { %3858 = vpow2.f32 %v3133_v56 }
0x1fa8   :  { %v3855_v13 = vpop.eup %3854  ;;  %3860 = vpow2.f32 %v3138_v2 }
0x1fa9   :  { %2678 = vrot.lane.b32.xlu0 %v3855_v13, %s3987_s0 }
0x1fb0   :  { %v3857_v4 = vpop.eup %3856 }
0x1fb1   :  { %2855 = vrot.lane.b32.xlu1 %v3857_v4, %s3987_s0  ;;  %v3859_v16 = vpop.eup %3858 }
0x1fb2   :  { %v2672_v47 = vadd.f32 1.0, %v3859_v16  ;;  %v3861_v28 = vpop.eup %3860 }
0x1fb3   :  { %v2849_v54 = vadd.f32 1.0, %v3861_v28 }
0x1fb4   :  { %3862 = vrcp.f32 %v2672_v47 }
0x1fb5   :  { %3864 = vrcp.f32 %v2849_v54 }
0x1fbe   :  { %v3863_v51 = vpop.eup %3862 }
0x1fbf   :  { %v3865_v14 = vpop.eup %3864  ;;  %v2676_v18 = vmul.f32 %v3863_v51, %v4567_v11 }
0x1fc0   :  { %v2853_v20 = vmul.f32 %v3865_v14, %v4605_v50 }
0x201b   :  { %v2679_v15 = vpop.permute.xlu0 %2678 }
0x201c   :  { %v2681_v33 = vmul.f32 %v3863_v51, %v2679_v15 }
0x201e   :  { %2683 = vrot.lane.b32.xlu0 %v2681_v33, %s3992_s2 }
0x2023   :  { %v2856_v44 = vpop.permute.xlu1 %2855 }
0x2024   :  { %v2858_v17 = vmul.f32 %v3865_v14, %v2856_v44 }
0x2026   :  { %2860 = vrot.lane.b32.xlu1 %v2858_v17, %s3992_s2 }
0x2090   :  { %v2684_v45 = vpop.permute.xlu0 %2683 }
0x2091   :  { %v2686_v55 = vadd.f32 %v2684_v45, %v2676_v18 }
0x2093   :  { %3866 = vtanh.f32 %v2686_v55 }
0x2098   :  { %v2861_v22 = vpop.permute.xlu1 %2860 }
0x2099   :  { %v2863_v23 = vadd.f32 %v2861_v22, %v2853_v20 }
0x209b   :  { %3868 = vtanh.f32 %v2863_v23 }
0x209d   :  { %v3867_v53 = vpop.eup %3866 }
0x209e   :  { %2689 = vrot.lane.b32.xlu0 %v3867_v53, %s3987_s0 }
0x20a5   :  { %v3869_v24 = vpop.eup %3868 }
0x20a6   :  { %2866 = vrot.lane.b32.xlu1 %v3869_v24, %s3987_s0 }
0x2110   :  { %v2690_v61 = vpop.permute.xlu0 %2689 }
0x2111   :  { %v2692_v21 = vmul.f32 %v3863_v51, %v2690_v61 }
0x2113   :  { %v2871_v60 = vpack.c.bf16 %v2692_v21, %v2692_v21 }
0x2115   :  { %2873 = vrot.lane.b32.xlu0 %v2871_v60, %s3992_s2 }
0x2118   :  { %v2867_v11 = vpop.permute.xlu1 %2866 }
0x2119   :  { %v2869_v25 = vmul.f32 %v3865_v14, %v2867_v11 }
0x211b   :  { %v2870_v26 = vpack.c.bf16 %v2869_v25, %v2869_v25 }
0x211d   :  { %2919 = vrot.lane.b32.xlu1 %v2870_v26, %s3992_s2 }
0x2187   :  { %v2874_v48 = vpop.permute.xlu0 %2873 }
0x2188   :  { %3596 = vmatmul.mubr.msk.bf16.vlgmr.msra.gmra.mrb[84].mxu0 %vm576_vm2, %v2874_v48 }
0x2189   :  { %3611 = vmatprep.mubr.msk.bf16.mxu0 %vm3990_vm1, %v3989_v0 }
0x218f   :  { %v2920_v27 = vpop.permute.xlu1 %2919 }
0x2190   :  { %3604 = vmatmul.mubr.msk.bf16.vlgmr.msra.gmra.mrb[84].mxu1 %vm576_vm2, %v2920_v27 }
0x225b   :  { %v2912_v29 = vpop.f32.mrb[84].mxu0 }
0x225c   :  { %v3597_v50 = vpop.f32.mrb[85].mxu0 }
0x225d   :  { %v2915_v30 = vpop.f32.mrb[86].mxu0 }
0x225e   :  { %v3598_v49 = vpop.f32.mrb[87].mxu0 }
0x2263   :  { %v2958_v31 = vpop.f32.mrb[84].mxu1 }
0x2264   :  { %v2959_v19 = vadd.f32 %v2958_v31, %v2912_v29  ;;  %v3605_v7 = vpop.f32.mrb[85].mxu1 }
0x2265   :  { %v2961_v32 = vpop.f32.mrb[86].mxu1 }
0x2266   :  { %v2964_v35 = vadd.f32 %v2959_v19, %v4087_v52  ;;  %v3606_v38 = vpop.f32.mrb[87].mxu1  ;;  %v3684_v52 = vld [vmem:[#allocation7 + $0x50] sm:$0xff]  }
0x2267   :  { %3608 = vmatpush3.bf16.msra.mxu0 %v3684_v52 }
0x2268   :  { %3870 = vtanh.f32 %v2964_v35  ;;  %v3141_v39 = vmul.f32 -1.442695, %v2964_v35  ;;  %3609 = vmatprep.subr.bf16.mxu0 %v3989_v0 }
0x226a   :  { %3872 = vpow2.f32 %v3141_v39 }
0x226b   :  { %3610 = vmatpush3.bf16.msra.mxu0 %v3685_v58 }
0x2272   :  { %v3871_v46 = vpop.eup %3870 }
0x2273   :  { %2974 = vrot.lane.b32.xlu0 %v3871_v46, %s3987_s0 }
0x2274   :  { %v3873_v3 = vpop.eup %3872 }
0x2275   :  { %v2968_v36 = vadd.f32 1.0, %v3873_v3 }
0x2277   :  { %3874 = vrcp.f32 %v2968_v36 }
0x2281   :  { %v3875_v41 = vpop.eup %3874 }
0x2282   :  { %v2972_v63 = vmul.f32 %v3875_v41, %v2686_v55 }
0x22e5   :  { %v2975_v43 = vpop.permute.xlu0 %2974 }
0x22e6   :  { %v2977_v12 = vmul.f32 %v3875_v41, %v2975_v43 }
0x22e8   :  { %2979 = vrot.lane.b32.xlu1 %v2977_v12, %s3992_s2 }
0x235a   :  { %v2980_v57 = vpop.permute.xlu1 %2979 }
0x235b   :  { %v2982_v37 = vadd.f32 %v2980_v57, %v2972_v63 }
0x235d   :  { %3876 = vtanh.f32 %v2982_v37 }
0x2367   :  { %v3877_v10 = vpop.eup %3876 }
0x2368   :  { %2985 = vrot.lane.b32.xlu0 %v3877_v10, %s3987_s0 }
0x23da   :  { %v2986_v8 = vpop.permute.xlu0 %2985 }
0x23db   :  { %v2988_v34 = vmul.f32 %v3875_v41, %v2986_v8 }
0x23dd   :  { %v2989_v42 = vpack.c.bf16 %v2988_v34, %v2988_v34 }
0x23df   :  { %2991 = vrot.lane.b32.xlu1 %v2989_v42, %s3992_s2 }
0x2451   :  { %v2992_v59 = vpop.permute.xlu1 %2991 }
0x2452   :  { %3612 = vmatmul.mubr.msk.bf16.vlgmr.msra.gmra.mrb[88].mxu0 %vm576_vm2, %v2992_v59 }
0x2525   :  { %v3042_v9 = vpop.f32.mrb[88].mxu0 }
0x2526   :  { %v3043_v40 = vadd.f32 %v3042_v9, %v4158_v1  ;;  %v3613_v6 = vpop.f32.mrb[89].mxu0 }
0x2527   :  { %v3045_v0 = vpop.f32.mrb[90].mxu0 }
0x2528   :  { %3048 = vst [vmem:[#allocation8] sm:$0x3] %v3043_v40  ;;  %v3614_v5 = vpop.f32.mrb[91].mxu0 }
0x2529   :  { %3965 = shalt.err (!%p3962_p0)
}
0x252a   :  { %s3966_s28 = scalar_lea.hbm %s4673_s3, 32 }
0x252b   :  { %p3967_p1 = scmp.ne.s32.totalorder %s4673_s3, %s3966_s28  ;;  %p3970_p2 = scmp.lt.u32.totalorder %s3966_s28, %s4673_s3 }
0x252d   :  { %p3972_p3 = pnand %p3970_p2, %p3967_p1 }
0x252f   :  { %3975 = shalt.err (!%p3972_p3)
}
0x2530   :  { %3058 = dma.vmem_to_hbm [thread:$0]  %s3056_s24, 32, %s4673_s3, [#allocation4]  }
0x2531   :  { %3980 = dma.done.wait [#allocation4], 32  }
0x2532   :  { %3981 = vsyncadd [#allocation4], 4294967264 }
0x2533   :  { %3062 = vsyncpa [#allocation3], 1 }
0x2534   :  { %3063 = vsyncpa [#allocation6], 1 }
0x2535   :  { %3064 = vsyncpa [#allocation4], 1 }

</bundles_post_ra>
